<compile_context>
chip_gen: v7x
topology: tpu7x:2x2x1
jax: 0.10.0
libtpu: 0.0.40
codegen_flags: <defaults>
</compile_context>

<pallas_src>
import functools

import jax
import jax.numpy as jnp
from jax.experimental import pallas as pl
from jax.experimental.pallas import tpu as pltpu


def ffn_kernel(x_ref, w1_ref, b1_ref, w2_ref, b2_ref, o_ref, xb_ref, *, tf):
    # x_ref:  (tm, D)  input row tile (native dtype), re-DMA'd only when the row block changes
    # w1_ref: (D, F)   bf16 linear1 weight, fully resident in VMEM (DMA'd once)
    # b1_ref: (1, F)   f32  linear1 bias, resident
    # w2_ref: (F, D)   bf16 linear2 weight, fully resident in VMEM (DMA'd once)
    # b2_ref: (1, D)   f32  linear2 bias, resident
    # o_ref:  (tm, D)  f32 output tile, resident across the f axis -> used as the accumulator
    # xb_ref: (tm, D)  bf16 scratch holding the cast row tile (cast once per row tile)
    f = pl.program_id(1)

    @pl.when(f == 0)
    def _init():
        # Cast the row tile to bf16 once; reused for every F chunk.
        xb_ref[...] = x_ref[...].astype(xb_ref.dtype)
        # Seed the resident output block with the linear2 bias (dropout2 p=0 -> identity).
        o_ref[...] = jnp.broadcast_to(b2_ref[...], o_ref.shape).astype(o_ref.dtype)

    off = pl.multiple_of(f * tf, tf)          # tf is a multiple of 128 -> aligned slices
    w1c = w1_ref[:, pl.ds(off, tf)]           # (D, tf)  bf16
    b1c = b1_ref[:, pl.ds(off, tf)]           # (1, tf)  f32
    w2c = w2_ref[pl.ds(off, tf), :]           # (tf, D)  bf16

    # linear1 chunk (f32 MXU accumulation) + bias + ReLU; dropout1 p=0 -> identity.
    h = jnp.dot(xb_ref[...], w1c, preferred_element_type=jnp.float32)
    h = jnp.maximum(h + b1c, 0.0)

    # linear2 partial product, accumulated directly into the resident f32 output block.
    # (bf16 cast of h is fused right before the dot and hides under the MXU.)
    o_ref[...] += jnp.dot(h.astype(w2c.dtype), w2c,
                          preferred_element_type=jnp.float32)


def _vmem_limit_bytes(tm, tf, D, F, x_itemsize):
    resident = 2 * (D * F) * 2 + F * 4 + D * 4            # bf16 W1+W2, f32 b1+b2 (single-buffered)
    pipelined = 2 * tm * D * x_itemsize + 2 * tm * D * 4   # x / out tiles, double-buffered
    scratch = tm * D * 2                                    # bf16 x tile
    interm = tm * tf * (4 + 2)                              # h (f32) + bf16 copy, compiler scratch
    est = resident + pipelined + scratch + interm + (16 << 20)   # + compiler headroom
    try:
        phys = pltpu.get_tpu_info().vmem_capacity_bytes     # 128 MiB v5e/v6e, 64 MiB v7x
    except Exception:
        phys = 64 * 1024 * 1024                              # conservative (v7x) fallback
    return int(min(max(est, 32 << 20), phys - (8 << 20)))    # always leave headroom on v7x


def expert_ffn(x, w1, b1, w2, b2, *, tm=512, tf=1024):
    """x: [M, D]; w1: [D, F]; b1: [F]; w2: [F, D]; b2: [D] (weights in (in, out) layout).

    Returns float32 [M, D].  (bf16 output would need a separate f32 accumulator scratch.)
    """
    M, D = x.shape
    Dw, F = w1.shape
    assert Dw == D and w2.shape == (F, D) and b1.shape == (F,) and b2.shape == (D,)

    tf = min(tf, F)
    assert F % tf == 0, "dim_feedforward must be a multiple of the F tile"
    assert tf % 128 == 0, "F tile must be lane-aligned (multiple of 128)"
    # Don't use a row tile (much) bigger than the token count.
    tm = max(8, min(tm, ((M + 7) // 8) * 8))

    # Weights as bf16 MXU operands (one-time cast; in a real model they'd already be bf16).
    w1b = w1.astype(jnp.bfloat16)
    w2b = w2.astype(jnp.bfloat16)
    b1_2d = b1.reshape(1, F).astype(jnp.float32)
    b2_2d = b2.reshape(1, D).astype(jnp.float32)

    m_blocks = pl.cdiv(M, tm)            # last row tile may be partial -> masked by Pallas
    grid = (m_blocks, F // tf)

    cost = pl.CostEstimate(
        flops=4 * m_blocks * tm * D * F,                      # two matmuls, 2*M*D*F each
        transcendentals=0,
        bytes_accessed=(x.size * x.dtype.itemsize             # x read once
                        + M * D * 4                           # f32 output write
                        + w1b.size * 2 + w2b.size * 2         # weights read ONCE (resident)
                        + b1_2d.size * 4 + b2_2d.size * 4),
    )

    kernel = functools.partial(ffn_kernel, tf=tf)

    out = pl.pallas_call(
        kernel,
        out_shape=jax.ShapeDtypeStruct((M, D), jnp.float32),
        grid_spec=pltpu.PrefetchScalarGridSpec(
            num_scalar_prefetch=0,
            grid=grid,
            in_specs=[
                pl.BlockSpec((tm, D), lambda i, f: (i, 0)),            # x row tile (constant over f)
                pl.BlockSpec(memory_space=pltpu.MemorySpace.VMEM),     # W1: fully resident in VMEM
                pl.BlockSpec(memory_space=pltpu.MemorySpace.VMEM),     # b1: resident
                pl.BlockSpec(memory_space=pltpu.MemorySpace.VMEM),     # W2: fully resident in VMEM
                pl.BlockSpec(memory_space=pltpu.MemorySpace.VMEM),     # b2: resident
            ],
            out_specs=pl.BlockSpec((tm, D), lambda i, f: (i, 0)),      # resident across f (accumulator)
            scratch_shapes=[pltpu.VMEM((tm, D), jnp.bfloat16)],        # bf16 cast of the x tile
        ),
        compiler_params=pltpu.CompilerParams(
            dimension_semantics=("parallel", "arbitrary"),
            vmem_limit_bytes=_vmem_limit_bytes(tm, tf, D, F, x.dtype.itemsize),
        ),
        cost_estimate=cost,
    )(x, w1b, b1_2d, w2b, b2_2d)

    return out


def reference_ffn(x, w1, b1, w2, b2):
    h = jnp.maximum(x @ w1 + b1, 0.0)
    return h @ w2 + b2


if __name__ == "__main__":
    # Small shapes consistent with the module (d_model -> dim_feedforward -> d_model),
    # scaled down from 1024/4096; M deliberately NOT a multiple of tm to exercise the
    # masked partial last row tile (no wrapper-side padding pass).
    d_model = 256
    dim_feedforward = 1024
    batch, seq = 2, 200            # M = 400 tokens -> row tiles of 256 and (masked) 144

    key = jax.random.PRNGKey(0)
    kx, k1, k2, k3, k4 = jax.random.split(key, 5)

    x = jax.random.normal(kx, (batch, seq, d_model), dtype=jnp.float32)

    # PyTorch nn.Linear stores weight as [out, in]; kernel uses the transposed [in, out].
    w1 = jax.random.normal(k1, (d_model, dim_feedforward), jnp.float32) * 0.02
    b1 = jax.random.normal(k2, (dim_feedforward,), jnp.float32) * 0.02
    w2 = jax.random.normal(k3, (dim_feedforward, d_model), jnp.float32) * 0.02
    b2 = jax.random.normal(k4, (d_model,), jnp.float32) * 0.02

    x2d = x.reshape(batch * seq, d_model)

    out = expert_ffn(x2d, w1, b1, w2, b2, tm=256, tf=512)
    out = jax.block_until_ready(out)

    ref = reference_ffn(x2d, w1, b1, w2, b2)
    assert out.shape == (batch * seq, d_model)
    # bf16 matmul operands (f32 accumulation) -> loosened tolerance vs the f32 reference.
    assert jnp.allclose(out, ref, atol=3e-2, rtol=3e-2), "mismatch vs reference"

    # Reshape back to [batch, seq, d_model] like the PyTorch module's output.
    out = out.reshape(batch, seq, d_model)
    print("KERNEL_OK")
</pallas_src>

<mosaic_0001>
module attributes {stable_mosaic.version = 11 : i64} {
  func.func @ffn_kernel(%arg0: i32, %arg1: i32, %arg2: memref<256x256xf32, #tpu.memory_space<vmem>>, %arg3: memref<256x1024xbf16, #tpu.memory_space<vmem>>, %arg4: memref<1x1024xf32, #tpu.memory_space<vmem>>, %arg5: memref<1024x256xbf16, #tpu.memory_space<vmem>>, %arg6: memref<1x256xf32, #tpu.memory_space<vmem>>, %arg7: memref<256x256xf32, #tpu.memory_space<vmem>>, %arg8: memref<256x256xbf16, #tpu.memory_space<vmem>>) attributes {dimension_semantics = [#tpu.dimension_semantics<parallel>, #tpu.dimension_semantics<arbitrary>], iteration_bounds = array<i64: 2, 2>, scalar_prefetch = 0 : i64, scratch_operands = 1 : i64, tpu.core_type = #tpu.core_type<tc>, window_params = [{transform_indices = @transform_0, window_bounds = array<i64: 256, 256>}, {pipeline_mode = #tpu.pipeline_mode<synchronous>, transform_indices = @transform_1, window_bounds = array<i64: 256, 1024>}, {pipeline_mode = #tpu.pipeline_mode<synchronous>, transform_indices = @transform_2, window_bounds = array<i64: 1, 1024>}, {pipeline_mode = #tpu.pipeline_mode<synchronous>, transform_indices = @transform_3, window_bounds = array<i64: 1024, 256>}, {pipeline_mode = #tpu.pipeline_mode<synchronous>, transform_indices = @transform_4, window_bounds = array<i64: 1, 256>}, {transform_indices = @transform_5, window_bounds = array<i64: 256, 256>}]} {
    %c0_i32 = arith.constant 0 : i32
    %0 = arith.cmpi eq, %arg1, %c0_i32 : i32
    %1 = arith.extui %0 : i1 to i32
    %c0_i32_0 = arith.constant 0 : i32
    %2 = arith.cmpi ne, %1, %c0_i32_0 : i32
    scf.if %2 {
      %c0_11 = arith.constant 0 : index
      %c0_12 = arith.constant 0 : index
      %22 = vector.load %arg2[%c0_11, %c0_12] : memref<256x256xf32, #tpu.memory_space<vmem>>, vector<256x256xf32>
      %23 = arith.truncf %22 : vector<256x256xf32> to vector<256x256xbf16>
      %c0_13 = arith.constant 0 : index
      %c0_14 = arith.constant 0 : index
      %24 = vector.load %arg8[%c0_13, %c0_14] : memref<256x256xbf16, #tpu.memory_space<vmem>>, vector<256x256xbf16>
      tpu.vector_store %arg8[%c0_13, %c0_14], %23 {strides = array<i32>} : memref<256x256xbf16, #tpu.memory_space<vmem>>, vector<256x256xbf16>,
      %c0_15 = arith.constant 0 : index
      %c0_16 = arith.constant 0 : index
      %25 = vector.load %arg6[%c0_15, %c0_16] : memref<1x256xf32, #tpu.memory_space<vmem>>, vector<1x256xf32>
      %26 = vector.shape_cast %25 : vector<1x256xf32> to vector<1x256xf32>
      %27 = vector.broadcast %26 : vector<1x256xf32> to vector<256x256xf32>
      %c0_17 = arith.constant 0 : index
      %c0_18 = arith.constant 0 : index
      %28 = vector.load %arg7[%c0_17, %c0_18] : memref<256x256xf32, #tpu.memory_space<vmem>>, vector<256x256xf32>
      tpu.vector_store %arg7[%c0_17, %c0_18], %27 {strides = array<i32>} : memref<256x256xf32, #tpu.memory_space<vmem>>, vector<256x256xf32>,
    } else {
    }
    %c512_i32 = arith.constant 512 : i32
    %3 = arith.muli %arg1, %c512_i32 : i32
    %4 = tpu.assume_multiple %3, 512 : i32
    %c0 = arith.constant 0 : index
    %5 = arith.index_cast %4 : i32 to index
    %6 = vector.load %arg3[%c0, %5] : memref<256x1024xbf16, #tpu.memory_space<vmem>>, vector<256x512xbf16>
    %c0_1 = arith.constant 0 : index
    %7 = arith.index_cast %4 : i32 to index
    %8 = vector.load %arg4[%c0_1, %7] : memref<1x1024xf32, #tpu.memory_space<vmem>>, vector<1x512xf32>
    %9 = arith.index_cast %4 : i32 to index
    %c0_2 = arith.constant 0 : index
    %10 = vector.load %arg5[%9, %c0_2] : memref<1024x256xbf16, #tpu.memory_space<vmem>>, vector<512x256xbf16>
    %c0_3 = arith.constant 0 : index
    %c0_4 = arith.constant 0 : index
    %11 = vector.load %arg8[%c0_3, %c0_4] : memref<256x256xbf16, #tpu.memory_space<vmem>>, vector<256x256xbf16>
    %cst = arith.constant dense<0.000000e+00> : vector<256x512xf32>
    %12 = tpu.matmul %11, %6, %cst {dimension_numbers = #tpu.dot_dimension_numbers<[1], [0], [0], [1], [0, 0, 1, 1], [], []>} : vector<256x256xbf16>, vector<256x512xbf16>, vector<256x512xf32> -> vector<256x512xf32>
    %13 = vector.broadcast %8 : vector<1x512xf32> to vector<256x512xf32>
    %14 = arith.addf %12, %13 : vector<256x512xf32>
    %cst_5 = arith.constant 0.000000e+00 : f32
    %15 = vector.broadcast %cst_5 : f32 to vector<256x512xf32>
    %16 = arith.maximumf %14, %15 : vector<256x512xf32>
    %c0_6 = arith.constant 0 : index
    %c0_7 = arith.constant 0 : index
    %17 = vector.load %arg7[%c0_6, %c0_7] : memref<256x256xf32, #tpu.memory_space<vmem>>, vector<256x256xf32>
    %18 = arith.truncf %16 : vector<256x512xf32> to vector<256x512xbf16>
    %cst_8 = arith.constant dense<0.000000e+00> : vector<256x256xf32>
    %19 = tpu.matmul %18, %10, %cst_8 {dimension_numbers = #tpu.dot_dimension_numbers<[1], [0], [0], [1], [0, 0, 1, 1], [], []>} : vector<256x512xbf16>, vector<512x256xbf16>, vector<256x256xf32> -> vector<256x256xf32>
    %20 = arith.addf %17, %19 : vector<256x256xf32>
    %c0_9 = arith.constant 0 : index
    %c0_10 = arith.constant 0 : index
    %21 = vector.load %arg7[%c0_9, %c0_10] : memref<256x256xf32, #tpu.memory_space<vmem>>, vector<256x256xf32>
    tpu.vector_store %arg7[%c0_9, %c0_10], %20 {strides = array<i32>} : memref<256x256xf32, #tpu.memory_space<vmem>>, vector<256x256xf32>,
    return
  }
  func.func @transform_0(%arg0: i32, %arg1: i32) -> (i32, i32) {
    %c0_i32 = arith.constant 0 : i32
    %c0_i32_0 = arith.constant 0 : i32
    return %arg0, %c0_i32 : i32, i32
  }
  func.func @transform_1(%arg0: i32, %arg1: i32) -> (i32, i32) {
    %c0_i32 = arith.constant 0 : i32
    %c0_i32_0 = arith.constant 0 : i32
    %c0_i32_1 = arith.constant 0 : i32
    return %c0_i32, %c0_i32_0 : i32, i32
  }
  func.func @transform_2(%arg0: i32, %arg1: i32) -> (i32, i32) {
    %c0_i32 = arith.constant 0 : i32
    %c0_i32_0 = arith.constant 0 : i32
    %c0_i32_1 = arith.constant 0 : i32
    return %c0_i32, %c0_i32_0 : i32, i32
  }
  func.func @transform_3(%arg0: i32, %arg1: i32) -> (i32, i32) {
    %c0_i32 = arith.constant 0 : i32
    %c0_i32_0 = arith.constant 0 : i32
    %c0_i32_1 = arith.constant 0 : i32
    return %c0_i32, %c0_i32_0 : i32, i32
  }
  func.func @transform_4(%arg0: i32, %arg1: i32) -> (i32, i32) {
    %c0_i32 = arith.constant 0 : i32
    %c0_i32_0 = arith.constant 0 : i32
    %c0_i32_1 = arith.constant 0 : i32
    return %c0_i32, %c0_i32_0 : i32, i32
  }
  func.func @transform_5(%arg0: i32, %arg1: i32) -> (i32, i32) {
    %c0_i32 = arith.constant 0 : i32
    %c0_i32_0 = arith.constant 0 : i32
    return %arg0, %c0_i32 : i32, i32
  }
}

</mosaic_0001>

<bundles_post_ra>
// kernel: tpu_custom_call.1
= control target key start
LH: loop header
LB: loop body
LE: loop exit
PB: predicated region body
PF: predicated region fallthrough
CT: control target
= control target key end

     0   :  { %s4385_s0 = inlined_call_operand.hbm [shape: f32[400,256], index: 0, kind: input, shape index: {}]   ;;  %s4386_s1 = inlined_call_operand.hbm [shape: bf16[256,1024], index: 1, kind: input, shape index: {}]   ;;  %s4387_s2 = inlined_call_operand.hbm [shape: f32[1,1024], index: 2, kind: input, shape index: {}]   ;;  %s4388_s3 = inlined_call_operand.hbm [shape: bf16[1024,256], index: 3, kind: input, shape index: {}]   ;;  %s4389_s4 = inlined_call_operand.vmem [shape: f32[1,256], index: 4, kind: input, shape index: {}]   ;;  %s4390_s5 = inlined_call_operand.hbm [shape: f32[400,256], index: 5, kind: output, shape index: {}]  }
   0x1   :  { %4401 = sst [smem:[#allocation23_spill]] %s4390_s5 }
   0x2   :  { %10 = vsyncpa [#allocation4], 0 }
   0x3   :  { %12 = vsyncpa [#allocation4 + $0x1], 0 }
   0x4   :  { %13 = vsyncpa [#allocation7], 0 }
   0x5   :  { %14 = vsyncpa [#allocation10], 0 }
   0x6   :  { %15 = vsyncpa [#allocation5], 0 }
   0x7   :  { %17 = vsyncpa [#allocation5 + $0x1], 0  ;;  %s3360_s18 = smov 0   ;;  %s3362_s19 = smov 0  }
   0x8   :  { %s3364_s20 = smov 0   ;;  %s3366_s21 = smov 0  }
   0x9   :  { %s3368_s22 = smov 0   ;;  %s3370_s23 = smov 0  }
   0xa   :  { %s3372_s24 = smov 0   ;;  %s3374_s25 = smov 0  }
   0xb LB: > { %4402 = sst [smem:[#allocation16_spill]] %s3287_s18  ;;  %s2654_s26 = sadd.s32 4294967295, %s3315_s25   ;;  %s3315_s25 = sphi %s3374_s25, %s23_s25   ;;  %s3311_s24 = sphi %s3372_s24, %s4435_s24   ;;  %s3307_s23 = sphi %s3370_s23, %s4429_s23   ;;  %s3303_s22 = sphi %s3368_s22, %s4434_s22   ;;  %s3299_s21 = sphi %s3366_s21, %s4428_s21   ;;  %s3295_s20 = sphi %s3364_s20, %s4433_s20   ;;  %s3291_s19 = sphi %s3362_s19, %s4432_s19   ;;  %s3287_s18 = sphi %s3360_s18, %s4431_s18  }
   0xc   : > { %4403 = sst [smem:[#allocation17_spill]] %s3303_s22  ;;  %s2655_s27 = sadd.s32 4294967294, %s3315_s25  }
   0xd   : > { %4404 = sst [smem:[#allocation18_spill]] %s3307_s23  ;;  %s32_s28 = sadd.s32 1, %s3307_s23 }
   0xe   : > { %s35_s29 = sadd.s32 1, %s3311_s24  ;;  %p33_p0 = scmp.ge.s32.totalorder %s32_s28, 2 }
   0xf   : > { %s42_s30 = sadd.s32 1, %s3295_s20  ;;  %p49_p1 = scmp.ne.s32.totalorder %s3295_s20, %s3291_s19 }
  0x10   : > { %p50_p2 = scmp.eq.s32.totalorder %s3315_s25, 0  ;;  %s4437_s28 = smov (%p33_p0, %s32_s28), 0 }
  0x11   : > { %4405 = sst [smem:[#allocation19_spill]] %s4437_s28  ;;  %s4439_s29 = smov (!%p33_p0, %s35_s29), %s3311_s24 }
  0x12   : > { %p3411_p3 = por %p50_p2, %p49_p1  ;;  %p55_p4 = scmp.ne.s32.totalorder %s3291_s19, %s3287_s18 }
  0x13   : > { %p37_p5 = scmp.ge.s32.totalorder %s4439_s29, 2  ;;  %p3417_p6 = scmp.eq.s32.totalorder %s2654_s26, 0 }
  0x14   : > { %s4406_s6 = scalar_select %p3411_p3, 1, 0 }
  0x15   : > { %s4407_s7 = scalar_select %p3417_p6, 1, 0 }
  0x16   : > { %p163_p7 = scmp.eq.s32.totalorder %s2654_s26, 3  ;;  %p169_p8 = scmp.eq.s32.totalorder %s2655_s27, 3 }
  0x17   : > { %s4441_s29 = smov (%p37_p5, %s4439_s29), 0  ;;  %p3425_p9 = por %p3417_p6, %p55_p4 }
  0x18   : > { %4408 = sst [smem:[#allocation20_spill]] %s4441_s29  ;;  %p3429_p10 = por %p163_p7, %p49_p1 }
  0x19   : > { %s4409_s8 = scalar_select %p3425_p9, 1, 0 }
  0x1a   : > { %s4410_s9 = scalar_select %p3429_p10, 1, 0 }
  0x1b   : > { %s39_s10 = ssub.s32 %s3311_s24, %s4441_s29  ;;  %p3435_p11 = por %p169_p8, %p55_p4 }
  0x1c   : > { %p40_p12 = scmp.eq.s32.totalorder %s39_s10, 0  ;;  %p2656_p13 = scmp.ge.s32.totalorder %s3315_s25, 1 }
  0x1d   : > { %s4411_s11 = scalar_select %p3435_p11, 1, 0 }
  0x1e   : > { %p176_p0 = scmp.lt.s32.totalorder %s3315_s25, 5  ;;  %s3317_s14 = smov [#allocation6]  }
  0x1f   : > { %4412 = sst [smem:[#allocation21_spill]] %s4411_s11  ;;  %s188_s15 = sshll.u32 %s3317_s14, 4  ;;  %s3450_s15 = int_to_ptr.vmem [resolvable:$true] %s188_s15 }
  0x20   : > { %s3442_s12 = scalar_select %p40_p12, %s3295_s20, %s42_s30  }
  0x21   : > { %p3444_p2 = pnand %p2656_p13, %p176_p0  ;;  %s3318_s17 = smov [#allocation8]  }
  0x22   : > { %4413 = sst [smem:[#allocation22_spill]] %s3442_s12  ;;  %s202_s26 = sshll.u32 %s3318_s17, 4  ;;  %s3458_s26 = int_to_ptr.vmem [resolvable:$true] %s202_s26 }
  0x23   : > { %s4414_s13 = scalar_select %p3444_p2, 1, 0 }
  0x24   : > { %p2905_p1 = pneg %p3444_p2  ;;  %s3319_s27 = smov [#allocation9]  }
  0x25   : > { %s3460_s30 = sshll.u32 %s3319_s27, 4  ;;  %s3097_s14 = scalar_lea.hbm %s4386_s1, 16384  ;;  %s213_s30 = int_to_ptr.vmem [resolvable:$true] %s3460_s30 }
  0x26   : > { %p3454_p4 = pnand %p2905_p1, %p3417_p6  ;;  %p3098_p5 = scmp.ne.s32.totalorder %s4386_s1, %s3097_s14 }
  0x27   : > { %p3104_p13 = scmp.lt.u32.totalorder %s3097_s14, %s4386_s1 }
  0x28   : > { %p3470_p7 = pneg %p3454_p4 }
  0x2a   : > { %p3100_p8 = pnand %p3470_p7, %p3098_p5 }
  0x2c   : > { %p3101_p12 = pneg %p3100_p8 }
  0x2e   : > { %p3106_p0 = pnand %p3104_p13, %p3101_p12 }
  0x30   : > { %3109 = shalt.err (!%p3106_p0)
}
  0x31   : > { %s3110_s23 = scalar_lea.vmem %s3450_s15, 16384  ;;  %p3118_p6 = scmp.lt.s32.totalorder %s3450_s15, %s3450_s15 }
  0x32   : > { %p3111_p1 = scmp.ne.s32.totalorder %s3450_s15, %s3110_s23  ;;  %p3119_p9 = scmp.lt.s32.totalorder %s3110_s23, %s3110_s23 }
  0x34   : > { %p3113_p11 = pnand %p3111_p1, %p3470_p7  ;;  %p3120_p5 = por %p3119_p9, %p3118_p6 }
  0x36   : > { %p3114_p10 = pneg %p3113_p11 }
  0x38   : > { %p3121_p8 = pnand %p3120_p5, %p3114_p10 }
  0x3a   : > { %3124 = shalt.err (!%p3121_p8)
}
  0x3b   : > { %s3320_s28 = smov 512   ;;  %s3321_s29 = smov 32  }
  0x3c   : > { %2908 = dma.hbm_to_vmem [thread:$0]  (!%p3454_p4), %s4386_s1, 16384, %s3450_s15, [#allocation7], %s3320_s28, %s3320_s28, %s3321_s29  }
  0x3d   : > { %s3125_s11 = scalar_lea.hbm %s4387_s2, 128 }
  0x3e   : > { %p3126_p6 = scmp.ne.s32.totalorder %s4387_s2, %s3125_s11  ;;  %p3132_p11 = scmp.lt.u32.totalorder %s3125_s11, %s4387_s2 }
  0x40   : > { %p3128_p9 = pnand %p3126_p6, %p3470_p7 }
  0x42   : > { %p3129_p10 = pneg %p3128_p9 }
  0x44   : > { %p3134_p12 = pnand %p3132_p11, %p3129_p10 }
  0x46   : > { %3137 = shalt.err (!%p3134_p12)
}
  0x47   : > { %s3138_s15 = scalar_lea.vmem %s3458_s26, 128  ;;  %p3146_p5 = scmp.lt.s32.totalorder %s3458_s26, %s3458_s26 }
  0x48   : > { %p3139_p13 = scmp.ne.s32.totalorder %s3458_s26, %s3138_s15  ;;  %p3147_p8 = scmp.lt.s32.totalorder %s3138_s15, %s3138_s15 }
  0x4a   : > { %p3141_p0 = pnand %p3139_p13, %p3470_p7  ;;  %p3148_p6 = por %p3147_p8, %p3146_p5 }
  0x4c   : > { %p3142_p1 = pneg %p3141_p0 }
  0x4e   : > { %p3149_p9 = pnand %p3148_p6, %p3142_p1 }
  0x50   : > { %3152 = shalt.err (!%p3149_p9)
}
  0x51   : > { %2911 = dma.hbm_to_vmem [thread:$0]  (!%p3454_p4), %s4387_s2, 128, %s3458_s26, [#allocation7]  }
  0x52   : > { %s3153_s28 = scalar_lea.hbm %s4388_s3, 16384 }
  0x53   : > { %p3154_p10 = scmp.ne.s32.totalorder %s4388_s3, %s3153_s28  ;;  %p3160_p13 = scmp.lt.u32.totalorder %s3153_s28, %s4388_s3 }
  0x55   : > { %p3156_p11 = pnand %p3154_p10, %p3470_p7 }
  0x57   : > { %p3157_p12 = pneg %p3156_p11 }
  0x59   : > { %p3162_p0 = pnand %p3160_p13, %p3157_p12 }
  0x5b   : > { %3165 = shalt.err (!%p3162_p0)
}
  0x5c   : > { %s3166_s27 = scalar_lea.vmem %s213_s30, 16384  ;;  %p3174_p6 = scmp.lt.s32.totalorder %s213_s30, %s213_s30 }
  0x5d   : > { %p3167_p1 = scmp.ne.s32.totalorder %s213_s30, %s3166_s27  ;;  %p3175_p9 = scmp.lt.s32.totalorder %s3166_s27, %s3166_s27 }
  0x5f   : > { %p3169_p5 = pnand %p3167_p1, %p3470_p7  ;;  %p3176_p2 = por %p3175_p9, %p3174_p6 }
  0x61   : > { %p3170_p8 = pneg %p3169_p5 }
  0x63   : > { %p3177_p3 = pnand %p3176_p2, %p3170_p8 }
  0x65   : > { %3180 = shalt.err (!%p3177_p3)
}
  0x66   : > { %s3322_s26 = smov 128   ;;  %s3323_s23 = smov 8  }
  0x67   : > { %2914 = dma.hbm_to_vmem [thread:$0]  (!%p3454_p4), %s4388_s3, 16384, %s213_s30, [#allocation10], %s3322_s26, %s3322_s26, %s3323_s23  }
  0x68   : > { %p2660_p10 = scmp.ge.s32.totalorder %s3315_s25, 4 }
  0x69   : > { %p4417_p11 = scmp.ne.s32.totalorder (!%p2660_p10), %s4406_s6, 0 }
  0x6a   : > { %225 = sbr.rel (%p2660_p10) target bundleno = 148 (0x94), region = 32 }
  0x71   : > { %228 = sbr.rel (!%p4417_p11) target bundleno = 148 (0x94), region = 36  ;;  %s229_s12 = sand.u32 (%p4417_p11), 1, %s3295_s20  }
  0x72   : > { %s2662_s18 = sshll.u32 (%p4417_p11), %s3311_s24, 5  ;;  %s2661_s22 = sshll.u32 (%p4417_p11), %s229_s12, 9 }
  0x73   : > { %s235_s11 = ssub.s32 (%p4417_p11), 50, %s2662_s18  ;;  %s3541_s29 = scalar_lea.sflag (%p4417_p11), [#allocation4], %s229_s12 }
  0x74   : > { %p236_p3 = scmp.lt.s32.totalorder (%p4417_p11), %s235_s11, 32  ;;  %s233_s30 = scalar_lea.vmem (%p4417_p11), [#allocation3], %s2661_s22 }
  0x78   : > { %s4443_s11 = smov (!%p236_p3, %s235_s11), 32 }
  0x79   : > { %s3538_s28 = sshll.u32 %s4443_s11, 8 }
  0x7a   : > { %s241_s16 = ssub.s32 8192, %s3538_s28 }
  0x7b   : > { %242 = vsyncadd %s3541_s29, %s241_s16  ;;  %p2665_p2 = scmp.ne.s32.totalorder %s3538_s28, 0  ;;  %s2822_s6 = sshll.u32 %s3311_s24, 13 }
  0x7c   : > { %s3549_s17 = scalar_lea.hbm %s4385_s0, %s2822_s6  ;;  %s248_s27 = sshll.u32 %s233_s30, 4  ;;  %s3551_s27 = int_to_ptr.vmem [resolvable:$true] %s248_s27 }
  0x7d   : > { %s3181_s26 = scalar_lea.hbm %s3549_s17, %s3538_s28  ;;  %s3185_s5 = scalar_lea.hbm %s4385_s0, 12800 }
  0x7e   : > { %p3182_p4 = scmp.ne.s32.totalorder %s3549_s17, %s3181_s26  ;;  %p3186_p13 = scmp.lt.u32.totalorder %s3549_s17, %s4385_s0 }
  0x7f   : > { %p3187_p0 = scmp.lt.u32.totalorder %s3185_s5, %s3181_s26  ;;  %p3189_p5 = scmp.lt.u32.totalorder %s3181_s26, %s3549_s17 }
  0x80   : > { %p3183_p7 = pnand %p3182_p4, %p2665_p2 }
  0x81   : > { %p3188_p1 = por %p3187_p0, %p3186_p13 }
  0x82   : > { %p3184_p12 = pneg %p3183_p7 }
  0x83   : > { %p3190_p8 = por %p3189_p5, %p3188_p1 }
  0x85   : > { %p3191_p6 = pnand %p3190_p8, %p3184_p12 }
  0x87   : > { %3194 = shalt.err (!%p3191_p6)
}
  0x88   : > { %s3195_s22 = scalar_lea.vmem %s3551_s27, %s3538_s28  ;;  %s3324_s11 = smov [#allocation3]  }
  0x89   : > { %p3196_p9 = scmp.ne.s32.totalorder %s3551_s27, %s3195_s22  ;;  %s3199_s16 = sshll.u32 %s3324_s11, 4  ;;  %s3200_s16 = int_to_ptr.vmem [resolvable:$false] %s3199_s16 }
  0x8a   : > { %s3201_s30 = scalar_lea.vmem %s3200_s16, 16384  ;;  %p3202_p3 = scmp.lt.s32.totalorder %s3551_s27, %s3200_s16 }
  0x8b   : > { %p3197_p10 = pnand %p3196_p9, %p2665_p2  ;;  %p3203_p4 = scmp.lt.s32.totalorder %s3201_s30, %s3195_s22 }
  0x8d   : > { %p3198_p11 = pneg %p3197_p10  ;;  %p3204_p7 = por %p3203_p4, %p3202_p3 }
  0x8f   : > { %p3205_p13 = pnand %p3204_p7, %p3198_p11 }
  0x91   : > { %3208 = shalt.err (!%p3205_p13)
}
  0x92   : > { %s3325_s6 = smov 256   ;;  %s3326_s10 = smov 16  }
  0x93   : > { %254 = dma.hbm_to_vmem [thread:$0]  (%p2665_p2), %s3549_s17, %s3538_s28, %s3551_s27, %s3541_s29, %s3325_s6, %s3325_s6, %s3326_s10  }
  0x94 PF: > { %p4418_p12 = scmp.ne.s32.totalorder %s4414_s13, 0 }
  0x95   : > { %s3581_s14 = sand.u32 (!%p4418_p12), 1, %s3291_s19   ;;  %p4419_p0 = scmp.ne.s32.totalorder (!%p4418_p12), %s4409_s8, 0 }
  0x96   : > { %260 = sbr.rel (%p4418_p12) target bundleno = 1012 (0x3f4), region = 40  ;;  %s2671_s26 = sshll.u32 (!%p4418_p12), %s3581_s14, 9 }
  0x97   : > { %s263_s23 = scalar_lea.sflag (!%p4418_p12), [#allocation4], %s3581_s14  ;;  %s3585_s15 = scalar_lea.vmem (!%p4418_p12), [#allocation3], %s2671_s26 }
  0x9d   : > { %3270 = dma.done.wait (%p4419_p0), %s263_s23, 8192  }
  0x9e   : > { %3272 = vsyncadd (%p4419_p0), %s263_s23, 4294959104  ;;  %p4420_p2 = scmp.ne.s32.totalorder %s4407_s7, 0 }
  0xa0   : > { %3274 = dma.done.wait (%p4420_p2), [#allocation7], 16512  }
  0xa1   : > { %3276 = vsyncadd (%p4420_p2), [#allocation7], 4294950784 }
  0xa2   : > { %3278 = dma.done.wait (%p4420_p2), [#allocation10], 16384  }
  0xa3   : > { %3280 = vsyncadd (%p4420_p2), [#allocation10], 4294950912  ;;  %s3599_s13 = scalar_lea.vmem [#allocation11], %s2671_s26  ;;  %p2676_p1 = scmp.ne.s32.totalorder %s3299_s21, 0 }
  0xa4   : > { %v321_v0 = vld [vmem:[%s3585_s15] sm:$0xff] (!%p2676_p1)  ;;  %v323_v1 = vld [vmem:[%s3585_s15 + $0x10] sm:$0xff] (!%p2676_p1)  ;;  %v322_v2 = vld [vmem:[%s3585_s15 + $0x8] sm:$0xff] (!%p2676_p1)  ;;  %v451_v48 = vlaneseq (!%p2676_p1) }
  0xa5   : > { %320 = sbr.rel (%p2676_p1) target bundleno = 223 (0xdf), region = 60  ;;  %v385_v3 = vpack.c.bf16 (!%p2676_p1), %v323_v1, %v321_v0  ;;  %v324_v4 = vld [vmem:[%s3585_s15 + $0x18] sm:$0xff] (!%p2676_p1)  ;;  %v325_v5 = vld [vmem:[%s3585_s15 + $0x20] sm:$0xff] (!%p2676_p1)  ;;  %v327_v6 = vld [vmem:[%s3585_s15 + $0x30] sm:$0xff] (!%p2676_p1) }
  0xa6   : > { %v386_v7 = vpack.c.bf16 (!%p2676_p1), %v324_v4, %v322_v2  ;;  %v387_v8 = vpack.c.bf16 (!%p2676_p1), %v327_v6, %v325_v5  ;;  %v326_v9 = vld [vmem:[%s3585_s15 + $0x28] sm:$0xff] (!%p2676_p1)  ;;  %v328_v10 = vld [vmem:[%s3585_s15 + $0x38] sm:$0xff] (!%p2676_p1)  ;;  %v329_v11 = vld [vmem:[%s3585_s15 + $0x40] sm:$0xff] (!%p2676_p1) }
  0xa7   : > { %417 = vst [vmem:[#allocation2] sm:$0xff] (!%p2676_p1), %v385_v3  ;;  %v388_v12 = vpack.c.bf16 (!%p2676_p1), %v328_v10, %v326_v9  ;;  %v331_v13 = vld [vmem:[%s3585_s15 + $0x50] sm:$0xff] (!%p2676_p1)  ;;  %v330_v14 = vld [vmem:[%s3585_s15 + $0x48] sm:$0xff] (!%p2676_p1)  ;;  %v332_v15 = vld [vmem:[%s3585_s15 + $0x58] sm:$0xff] (!%p2676_p1)  ;;  %v452_v3 = vshrl.u32 (!%p2676_p1), %v451_v48, 7 }
  0xa8   : > { %418 = vst [vmem:[#allocation2 + $0x8] sm:$0xff] (!%p2676_p1), %v386_v7  ;;  %419 = vst [vmem:[#allocation2 + $0x10] sm:$0xff] (!%p2676_p1), %v387_v8  ;;  %v389_v16 = vpack.c.bf16 (!%p2676_p1), %v331_v13, %v329_v11  ;;  %v390_v17 = vpack.c.bf16 (!%p2676_p1), %v332_v15, %v330_v14  ;;  %v333_v18 = vld [vmem:[%s3585_s15 + $0x60] sm:$0xff] (!%p2676_p1)  ;;  %v335_v19 = vld [vmem:[%s3585_s15 + $0x70] sm:$0xff] (!%p2676_p1) }
  0xa9   : > { %v334_v20 = vld [vmem:[%s3585_s15 + $0x68] sm:$0xff] (!%p2676_p1)  ;;  %420 = vst [vmem:[#allocation2 + $0x18] sm:$0xff] (!%p2676_p1), %v388_v12  ;;  %v391_v21 = vpack.c.bf16 (!%p2676_p1), %v335_v19, %v333_v18  ;;  %v336_v22 = vld [vmem:[%s3585_s15 + $0x78] sm:$0xff] (!%p2676_p1)  ;;  %v337_v23 = vld [vmem:[%s3585_s15 + $0x80] sm:$0xff] (!%p2676_p1) }
  0xaa   : > { %v339_v24 = vld [vmem:[%s3585_s15 + $0x90] sm:$0xff] (!%p2676_p1)  ;;  %421 = vst [vmem:[#allocation2 + $0x20] sm:$0xff] (!%p2676_p1), %v389_v16  ;;  %422 = vst [vmem:[#allocation2 + $0x28] sm:$0xff] (!%p2676_p1), %v390_v17  ;;  %v392_v25 = vpack.c.bf16 (!%p2676_p1), %v336_v22, %v334_v20  ;;  %v338_v27 = vld [vmem:[%s3585_s15 + $0x88] sm:$0xff] (!%p2676_p1)  ;;  %v453_v22 = vsub.s32 (!%p2676_p1), 0, %v452_v3 }
  0xab   : > { %v393_v26 = vpack.c.bf16 (!%p2676_p1), %v339_v24, %v337_v23  ;;  %v340_v28 = vld [vmem:[%s3585_s15 + $0x98] sm:$0xff] (!%p2676_p1)  ;;  %v341_v29 = vld [vmem:[%s3585_s15 + $0xa0] sm:$0xff] (!%p2676_p1)  ;;  %423 = vst [vmem:[#allocation2 + $0x30] sm:$0xff] (!%p2676_p1), %v391_v21  ;;  %v343_v31 = vld [vmem:[%s3585_s15 + $0xb0] sm:$0xff] (!%p2676_p1)  ;;  %v457_v23 = vsub.s32 (!%p2676_p1), 1, %v452_v3 }
  0xac   : > { %v394_v30 = vpack.c.bf16 %v340_v28, %v338_v27  ;;  %v342_v32 = vld [vmem:[%s3585_s15 + $0xa8] sm:$0xff]  ;;  %v344_v33 = vld [vmem:[%s3585_s15 + $0xb8] sm:$0xff]  ;;  %424 = vst [vmem:[#allocation2 + $0x38] sm:$0xff] %v392_v25  ;;  %v395_v34 = vpack.c.bf16 %v343_v31, %v341_v29  ;;  %v345_v36 = vld [vmem:[%s3585_s15 + $0xc0] sm:$0xff] }
  0xad   : > { %425 = vst [vmem:[#allocation2 + $0x40] sm:$0xff] %v393_v26  ;;  %v396_v35 = vpack.c.bf16 %v344_v33, %v342_v32  ;;  %v347_v37 = vld [vmem:[%s3585_s15 + $0xd0] sm:$0xff]  ;;  %v346_v38 = vld [vmem:[%s3585_s15 + $0xc8] sm:$0xff]  ;;  %v348_v40 = vld [vmem:[%s3585_s15 + $0xd8] sm:$0xff] }
  0xae   : > { %426 = vst [vmem:[#allocation2 + $0x48] sm:$0xff] %v394_v30  ;;  %v397_v39 = vpack.c.bf16 %v347_v37, %v345_v36  ;;  %v349_v41 = vld [vmem:[%s3585_s15 + $0xe0] sm:$0xff]  ;;  %v351_v42 = vld [vmem:[%s3585_s15 + $0xf0] sm:$0xff]  ;;  %427 = vst [vmem:[#allocation2 + $0x50] sm:$0xff] %v395_v34  ;;  %v398_v43 = vpack.c.bf16 %v348_v40, %v346_v38 }
  0xaf   : > { %428 = vst [vmem:[#allocation2 + $0x58] sm:$0xff] %v396_v35  ;;  %v399_v44 = vpack.c.bf16 %v351_v42, %v349_v41  ;;  %v350_v45 = vld [vmem:[%s3585_s15 + $0xe8] sm:$0xff]  ;;  %v352_v46 = vld [vmem:[%s3585_s15 + $0xf8] sm:$0xff]  ;;  %v353_v47 = vld [vmem:[%s3585_s15 + $0x100] sm:$0xff] }
  0xb0   : > { %429 = vst [vmem:[#allocation2 + $0x60] sm:$0xff] %v397_v39  ;;  %v400_v49 = vpack.c.bf16 %v352_v46, %v350_v45  ;;  %v355_v50 = vld [vmem:[%s3585_s15 + $0x110] sm:$0xff]  ;;  %v354_v51 = vld [vmem:[%s3585_s15 + $0x108] sm:$0xff]  ;;  %v356_v52 = vld [vmem:[%s3585_s15 + $0x118] sm:$0xff] }
  0xb1   : > { %430 = vst [vmem:[#allocation2 + $0x68] sm:$0xff] %v398_v43  ;;  %431 = vst [vmem:[#allocation2 + $0x70] sm:$0xff] %v399_v44  ;;  %v401_v53 = vpack.c.bf16 %v355_v50, %v353_v47  ;;  %v402_v54 = vpack.c.bf16 %v356_v52, %v354_v51  ;;  %v357_v55 = vld [vmem:[%s3585_s15 + $0x120] sm:$0xff]  ;;  %v359_v56 = vld [vmem:[%s3585_s15 + $0x130] sm:$0xff] }
  0xb2   : > { %v358_v57 = vld [vmem:[%s3585_s15 + $0x128] sm:$0xff]  ;;  %432 = vst [vmem:[#allocation2 + $0x78] sm:$0xff] %v400_v49  ;;  %v403_v58 = vpack.c.bf16 %v359_v56, %v357_v55  ;;  %v360_v59 = vld [vmem:[%s3585_s15 + $0x138] sm:$0xff]  ;;  %v361_v60 = vld [vmem:[%s3585_s15 + $0x140] sm:$0xff] }
  0xb3   : > { %v363_v61 = vld [vmem:[%s3585_s15 + $0x150] sm:$0xff]  ;;  %433 = vst [vmem:[#allocation2 + $0x80] sm:$0xff] %v401_v53  ;;  %434 = vst [vmem:[#allocation2 + $0x88] sm:$0xff] %v402_v54  ;;  %v404_v62 = vpack.c.bf16 %v360_v59, %v358_v57  ;;  %v362_v0 = vld [vmem:[%s3585_s15 + $0x148] sm:$0xff] }
  0xb4   : > { %v405_v63 = vpack.c.bf16 %v363_v61, %v361_v60  ;;  %v364_v1 = vld [vmem:[%s3585_s15 + $0x158] sm:$0xff]  ;;  %v365_v2 = vld [vmem:[%s3585_s15 + $0x160] sm:$0xff]  ;;  %435 = vst [vmem:[#allocation2 + $0x90] sm:$0xff] %v403_v58  ;;  %v367_v5 = vld [vmem:[%s3585_s15 + $0x170] sm:$0xff] }
  0xb5   : > { %v406_v4 = vpack.c.bf16 %v364_v1, %v362_v0  ;;  %v366_v6 = vld [vmem:[%s3585_s15 + $0x168] sm:$0xff]  ;;  %v368_v7 = vld [vmem:[%s3585_s15 + $0x178] sm:$0xff]  ;;  %436 = vst [vmem:[#allocation2 + $0x98] sm:$0xff] %v404_v62  ;;  %v407_v8 = vpack.c.bf16 %v367_v5, %v365_v2  ;;  %v369_v10 = vld [vmem:[%s3585_s15 + $0x180] sm:$0xff] }
  0xb6   : > { %437 = vst [vmem:[#allocation2 + $0xa0] sm:$0xff] %v405_v63  ;;  %v408_v9 = vpack.c.bf16 %v368_v7, %v366_v6  ;;  %v371_v11 = vld [vmem:[%s3585_s15 + $0x190] sm:$0xff]  ;;  %v370_v12 = vld [vmem:[%s3585_s15 + $0x188] sm:$0xff]  ;;  %v372_v14 = vld [vmem:[%s3585_s15 + $0x198] sm:$0xff] }
  0xb7   : > { %438 = vst [vmem:[#allocation2 + $0xa8] sm:$0xff] %v406_v4  ;;  %v409_v13 = vpack.c.bf16 %v371_v11, %v369_v10  ;;  %v373_v15 = vld [vmem:[%s3585_s15 + $0x1a0] sm:$0xff]  ;;  %v375_v16 = vld [vmem:[%s3585_s15 + $0x1b0] sm:$0xff]  ;;  %439 = vst [vmem:[#allocation2 + $0xb0] sm:$0xff] %v407_v8  ;;  %v410_v17 = vpack.c.bf16 %v372_v14, %v370_v12 }
  0xb8   : > { %440 = vst [vmem:[#allocation2 + $0xb8] sm:$0xff] %v408_v9  ;;  %v411_v18 = vpack.c.bf16 %v375_v16, %v373_v15  ;;  %v374_v19 = vld [vmem:[%s3585_s15 + $0x1a8] sm:$0xff]  ;;  %v376_v20 = vld [vmem:[%s3585_s15 + $0x1b8] sm:$0xff]  ;;  %v377_v21 = vld [vmem:[%s3585_s15 + $0x1c0] sm:$0xff] }
  0xb9   : > { %441 = vst [vmem:[#allocation2 + $0xc0] sm:$0xff] %v409_v13  ;;  %v412_v24 = vpack.c.bf16 %v376_v20, %v374_v19  ;;  %v379_v25 = vld [vmem:[%s3585_s15 + $0x1d0] sm:$0xff]  ;;  %v378_v26 = vld [vmem:[%s3585_s15 + $0x1c8] sm:$0xff]  ;;  %v380_v27 = vld [vmem:[%s3585_s15 + $0x1d8] sm:$0xff] }
  0xba   : > { %442 = vst [vmem:[#allocation2 + $0xc8] sm:$0xff] %v410_v17  ;;  %443 = vst [vmem:[#allocation2 + $0xd0] sm:$0xff] %v411_v18  ;;  %v413_v28 = vpack.c.bf16 %v379_v25, %v377_v21  ;;  %v414_v29 = vpack.c.bf16 %v380_v27, %v378_v26  ;;  %v381_v30 = vld [vmem:[%s3585_s15 + $0x1e0] sm:$0xff]  ;;  %v383_v31 = vld [vmem:[%s3585_s15 + $0x1f0] sm:$0xff] }
  0xbb   : > { %v382_v32 = vld [vmem:[%s3585_s15 + $0x1e8] sm:$0xff]  ;;  %444 = vst [vmem:[#allocation2 + $0xd8] sm:$0xff] %v412_v24  ;;  %v415_v33 = vpack.c.bf16 %v383_v31, %v381_v30  ;;  %v384_v34 = vld [vmem:[%s3585_s15 + $0x1f8] sm:$0xff]  ;;  %v449_v35 = vld [vmem:[%s4389_s4] sm:$0x3] }
  0xbc   : > { %445 = vst [vmem:[#allocation2 + $0xe0] sm:$0xff] %v413_v28  ;;  %446 = vst [vmem:[#allocation2 + $0xe8] sm:$0xff] %v414_v29  ;;  %v416_v36 = vpack.c.bf16 %v384_v34, %v382_v32  ;;  %v454_v37 = vrot.slane %v449_v35, %v453_v22  ;;  %v3669_v38 = vrot.slane %v449_v35, %v457_v23 }
  0xbd   : > { %447 = vst [vmem:[#allocation2 + $0xf0] sm:$0xff] %v415_v33 }
  0xbe   : > { %448 = vst [vmem:[#allocation2 + $0xf8] sm:$0xff] %v416_v36  ;;  %461 = vst [vmem:[%s3599_s13] sm:$0xff] %v454_v37 }
  0xbf   : > { %463 = vst [vmem:[%s3599_s13 + $0x10] sm:$0xff] %v454_v37  ;;  %465 = vst [vmem:[%s3599_s13 + $0x20] sm:$0xff] %v454_v37 }
  0xc0   : > { %467 = vst [vmem:[%s3599_s13 + $0x30] sm:$0xff] %v454_v37  ;;  %469 = vst [vmem:[%s3599_s13 + $0x40] sm:$0xff] %v454_v37 }
  0xc1   : > { %471 = vst [vmem:[%s3599_s13 + $0x50] sm:$0xff] %v454_v37  ;;  %473 = vst [vmem:[%s3599_s13 + $0x60] sm:$0xff] %v454_v37 }
  0xc2   : > { %475 = vst [vmem:[%s3599_s13 + $0x70] sm:$0xff] %v454_v37  ;;  %477 = vst [vmem:[%s3599_s13 + $0x80] sm:$0xff] %v454_v37 }
  0xc3   : > { %479 = vst [vmem:[%s3599_s13 + $0x90] sm:$0xff] %v454_v37  ;;  %481 = vst [vmem:[%s3599_s13 + $0xa0] sm:$0xff] %v454_v37 }
  0xc4   : > { %483 = vst [vmem:[%s3599_s13 + $0xb0] sm:$0xff] %v454_v37  ;;  %485 = vst [vmem:[%s3599_s13 + $0xc0] sm:$0xff] %v454_v37 }
  0xc5   : > { %487 = vst [vmem:[%s3599_s13 + $0xd0] sm:$0xff] %v454_v37  ;;  %489 = vst [vmem:[%s3599_s13 + $0xe0] sm:$0xff] %v454_v37 }
  0xc6   : > { %491 = vst [vmem:[%s3599_s13 + $0xf0] sm:$0xff] %v454_v37  ;;  %493 = vst [vmem:[%s3599_s13 + $0x100] sm:$0xff] %v454_v37 }
  0xc7   : > { %495 = vst [vmem:[%s3599_s13 + $0x110] sm:$0xff] %v454_v37  ;;  %497 = vst [vmem:[%s3599_s13 + $0x120] sm:$0xff] %v454_v37 }
  0xc8   : > { %499 = vst [vmem:[%s3599_s13 + $0x130] sm:$0xff] %v454_v37  ;;  %501 = vst [vmem:[%s3599_s13 + $0x140] sm:$0xff] %v454_v37 }
  0xc9   : > { %503 = vst [vmem:[%s3599_s13 + $0x150] sm:$0xff] %v454_v37  ;;  %505 = vst [vmem:[%s3599_s13 + $0x160] sm:$0xff] %v454_v37 }
  0xca   : > { %507 = vst [vmem:[%s3599_s13 + $0x170] sm:$0xff] %v454_v37  ;;  %509 = vst [vmem:[%s3599_s13 + $0x180] sm:$0xff] %v454_v37 }
  0xcb   : > { %511 = vst [vmem:[%s3599_s13 + $0x190] sm:$0xff] %v454_v37  ;;  %513 = vst [vmem:[%s3599_s13 + $0x1a0] sm:$0xff] %v454_v37 }
  0xcc   : > { %515 = vst [vmem:[%s3599_s13 + $0x1b0] sm:$0xff] %v454_v37  ;;  %517 = vst [vmem:[%s3599_s13 + $0x1c0] sm:$0xff] %v454_v37 }
  0xcd   : > { %519 = vst [vmem:[%s3599_s13 + $0x1d0] sm:$0xff] %v454_v37  ;;  %521 = vst [vmem:[%s3599_s13 + $0x1e0] sm:$0xff] %v454_v37 }
  0xce   : > { %523 = vst [vmem:[%s3599_s13 + $0x1f0] sm:$0xff] %v454_v37  ;;  %462 = vst [vmem:[%s3599_s13 + $0x8] sm:$0xff] %v3669_v38 }
  0xcf   : > { %464 = vst [vmem:[%s3599_s13 + $0x18] sm:$0xff] %v3669_v38  ;;  %466 = vst [vmem:[%s3599_s13 + $0x28] sm:$0xff] %v3669_v38 }
  0xd0   : > { %468 = vst [vmem:[%s3599_s13 + $0x38] sm:$0xff] %v3669_v38  ;;  %470 = vst [vmem:[%s3599_s13 + $0x48] sm:$0xff] %v3669_v38 }
  0xd1   : > { %472 = vst [vmem:[%s3599_s13 + $0x58] sm:$0xff] %v3669_v38  ;;  %474 = vst [vmem:[%s3599_s13 + $0x68] sm:$0xff] %v3669_v38 }
  0xd2   : > { %476 = vst [vmem:[%s3599_s13 + $0x78] sm:$0xff] %v3669_v38  ;;  %478 = vst [vmem:[%s3599_s13 + $0x88] sm:$0xff] %v3669_v38 }
  0xd3   : > { %480 = vst [vmem:[%s3599_s13 + $0x98] sm:$0xff] %v3669_v38  ;;  %482 = vst [vmem:[%s3599_s13 + $0xa8] sm:$0xff] %v3669_v38 }
  0xd4   : > { %484 = vst [vmem:[%s3599_s13 + $0xb8] sm:$0xff] %v3669_v38  ;;  %486 = vst [vmem:[%s3599_s13 + $0xc8] sm:$0xff] %v3669_v38 }
  0xd5   : > { %488 = vst [vmem:[%s3599_s13 + $0xd8] sm:$0xff] %v3669_v38  ;;  %490 = vst [vmem:[%s3599_s13 + $0xe8] sm:$0xff] %v3669_v38 }
  0xd6   : > { %492 = vst [vmem:[%s3599_s13 + $0xf8] sm:$0xff] %v3669_v38  ;;  %494 = vst [vmem:[%s3599_s13 + $0x108] sm:$0xff] %v3669_v38 }
  0xd7   : > { %496 = vst [vmem:[%s3599_s13 + $0x118] sm:$0xff] %v3669_v38  ;;  %498 = vst [vmem:[%s3599_s13 + $0x128] sm:$0xff] %v3669_v38 }
  0xd8   : > { %500 = vst [vmem:[%s3599_s13 + $0x138] sm:$0xff] %v3669_v38  ;;  %502 = vst [vmem:[%s3599_s13 + $0x148] sm:$0xff] %v3669_v38 }
  0xd9   : > { %504 = vst [vmem:[%s3599_s13 + $0x158] sm:$0xff] %v3669_v38  ;;  %506 = vst [vmem:[%s3599_s13 + $0x168] sm:$0xff] %v3669_v38 }
  0xda   : > { %508 = vst [vmem:[%s3599_s13 + $0x178] sm:$0xff] %v3669_v38  ;;  %510 = vst [vmem:[%s3599_s13 + $0x188] sm:$0xff] %v3669_v38 }
  0xdb   : > { %512 = vst [vmem:[%s3599_s13 + $0x198] sm:$0xff] %v3669_v38  ;;  %514 = vst [vmem:[%s3599_s13 + $0x1a8] sm:$0xff] %v3669_v38 }
  0xdc   : > { %516 = vst [vmem:[%s3599_s13 + $0x1b8] sm:$0xff] %v3669_v38  ;;  %518 = vst [vmem:[%s3599_s13 + $0x1c8] sm:$0xff] %v3669_v38 }
  0xdd   : > { %520 = vst [vmem:[%s3599_s13 + $0x1d8] sm:$0xff] %v3669_v38  ;;  %522 = vst [vmem:[%s3599_s13 + $0x1e8] sm:$0xff] %v3669_v38 }
  0xde   : > { %524 = vst [vmem:[%s3599_s13 + $0x1f8] sm:$0xff] %v3669_v38 }
  0xdf PF: > { %s2677_s28 = sshll.u32 %s3299_s21, 9  ;;  %s2515_s12 = scalar_lea.sflag [#allocation5], %s3581_s14 }
  0xe0   : > { %s3772_s29 = sshra.s32 %s2677_s28, 7  ;;  %s3856_s5 = scalar_lea.vmem [#allocation9], %s2677_s28 }
  0xe1   : > { %s2678_s17 = sshll.u32 %s3772_s29, 2  ;;  %s594_s21 = scalar_lea.vmem [#allocation8], %s3772_s29 }
  0xe2   : > { %v3768_v39 = vld [vmem:[#allocation2 + $0x8] sm:$0xff]  ;;  %s3776_s27 = scalar_lea.vmem [#allocation6], %s2678_s17  ;;  %p4421_p5 = scmp.ne.s32.totalorder %s4410_s9, 0 }
  0xe3   : > { %1070 = vmatprep.mubr.bf16.mxu1 %v3768_v39  ;;  %v530_v40 = vld [vmem:[%s3776_s27] sm:$0xff]  ;;  %s4422_s18 = sld [smem:[#allocation17_spill]] (%p4421_p5) }
  0xe4   : > { %v532_v41 = vld [vmem:[%s3776_s27 + $0x20] sm:$0xff] }
  0xe5   : > { %v534_v42 = vld [vmem:[%s3776_s27 + $0x40] sm:$0xff]  ;;  %v2682_v43 = vcombine.high %v530_v40, %v532_v41  ;;  %v2681_v44 = vcombine.low %v530_v40, %v532_v41  ;;  %v531_v40 = vld [vmem:[%s3776_s27 + $0x8] sm:$0xff] }
  0xe6   : > { %v536_v45 = vld [vmem:[%s3776_s27 + $0x60] sm:$0xff]  ;;  %v533_v41 = vld [vmem:[%s3776_s27 + $0x28] sm:$0xff] }
  0xe7   : > { %v2686_v46 = vcombine.high %v534_v42, %v536_v45  ;;  %v538_v47 = vld [vmem:[%s3776_s27 + $0x80] sm:$0xff]  ;;  %1038 = vmatprep.subr.bf16.mxu1 %v2682_v43  ;;  %v2685_v49 = vcombine.low %v534_v42, %v536_v45  ;;  %v2684_v43 = vcombine.high %v531_v40, %v533_v41  ;;  %v537_v45 = vld [vmem:[%s3776_s27 + $0x68] sm:$0xff] }
  0xe8   : > { %v540_v48 = vld [vmem:[%s3776_s27 + $0xa0] sm:$0xff]  ;;  %1039 = vmatpush1.bf16.msra.mxu1 %v2681_v44  ;;  %v535_v44 = vld [vmem:[%s3776_s27 + $0x48] sm:$0xff] }
  0xe9   : > { %1040 = vmatprep.subr.bf16.mxu1 %v2686_v46  ;;  %v2690_v50 = vcombine.high %v538_v47, %v540_v48  ;;  %v542_v51 = vld [vmem:[%s3776_s27 + $0xc0] sm:$0xff]  ;;  %v2689_v53 = vcombine.low %v538_v47, %v540_v48  ;;  %v2683_v47 = vcombine.low %v531_v40, %v533_v41  ;;  %v3816_v48 = vld [vmem:[#allocation2 + $0x18] sm:$0xff]  ;;  %v3876_v40 = vld [vmem:[#allocation2 + $0x68] sm:$0xff]  ;;  %s2810_s22 = sshll.u32 (%p4421_p5), %s4422_s18, 5 }
  0xea   : > { %v544_v52 = vld [vmem:[%s3776_s27 + $0xe0] sm:$0xff]  ;;  %s2523_s11 = ssub.s32 (%p4421_p5), 50, %s2810_s22 }
  0xeb   : > { %v2694_v54 = vcombine.high %v542_v51, %v544_v52  ;;  %v546_v55 = vld [vmem:[%s3776_s27 + $0x100] sm:$0xff]  ;;  %v2693_v57 = vcombine.low %v542_v51, %v544_v52  ;;  %v541_v51 = vld [vmem:[%s3776_s27 + $0xa8] sm:$0xff]  ;;  %v2687_v52 = vcombine.low %v535_v44, %v537_v45  ;;  %p2524_p8 = scmp.lt.s32.totalorder (%p4421_p5), %s2523_s11, 32 }
  0xec   : > { %1041 = vmatpush1.bf16.msra.mxu1 %v2685_v49  ;;  %v548_v56 = vld [vmem:[%s3776_s27 + $0x120] sm:$0xff]  ;;  %v2688_v49 = vcombine.high %v535_v44, %v537_v45  ;;  %v3010_v45 = vld [vmem:[%s3856_s5 + $0x34] ss:$8 sps:$4 sm:$0xff]  }
  0xed   : > { %1042 = vmatprep.subr.bf16.mxu1 %v2690_v50  ;;  %v2698_v58 = vcombine.high %v546_v55, %v548_v56  ;;  %v550_v59 = vld [vmem:[%s3776_s27 + $0x140] sm:$0xff]  ;;  %v2697_v61 = vcombine.low %v546_v55, %v548_v56  ;;  %v539_v50 = vld [vmem:[%s3776_s27 + $0x88] sm:$0xff]  ;;  %v3824_v56 = vld [vmem:[#allocation2 + $0x10] sm:$0xff] }
  0xee   : > { %v552_v60 = vld [vmem:[%s3776_s27 + $0x160] sm:$0xff]  ;;  %v545_v55 = vld [vmem:[%s3776_s27 + $0xe8] sm:$0xff] }
  0xef   : > { %v2702_v62 = vcombine.high %v550_v59, %v552_v60  ;;  %v554_v63 = vld [vmem:[%s3776_s27 + $0x180] sm:$0xff]  ;;  %v2701_v1 = vcombine.low %v550_v59, %v552_v60  ;;  %v547_v60 = vld [vmem:[%s3776_s27 + $0x108] sm:$0xff] }
  0xf0   : > { %1043 = vmatpush1.bf16.msra.mxu1 %v2689_v53  ;;  %v556_v0 = vld [vmem:[%s3776_s27 + $0x1a0] sm:$0xff]  ;;  %v2692_v53 = vcombine.high %v539_v50, %v541_v51 }
  0xf1   : > { %1044 = vmatprep.subr.bf16.mxu1 %v2694_v54  ;;  %v2706_v2 = vcombine.high %v554_v63, %v556_v0  ;;  %v558_v3 = vld [vmem:[%s3776_s27 + $0x1c0] sm:$0xff]  ;;  %v2705_v5 = vcombine.low %v554_v63, %v556_v0  ;;  %v543_v54 = vld [vmem:[%s3776_s27 + $0xc8] sm:$0xff] }
  0xf2   : > { %v560_v4 = vld [vmem:[%s3776_s27 + $0x1e0] sm:$0xff]  ;;  %v2696_v59 = vcombine.high %v543_v54, %v545_v55  ;;  %v551_v0 = vld [vmem:[%s3776_s27 + $0x148] sm:$0xff] }
  0xf3   : > { %v2710_v6 = vcombine.high %v558_v3, %v560_v4  ;;  %v562_v7 = vld [vmem:[%s3776_s27 + $0x200] sm:$0xff]  ;;  %v2709_v9 = vcombine.low %v558_v3, %v560_v4  ;;  %v3836_v4 = vld [vmem:[#allocation2 + $0x38] sm:$0xff] }
  0xf4   : > { %1045 = vmatpush1.bf16.msra.mxu1 %v2693_v57  ;;  %v564_v8 = vld [vmem:[%s3776_s27 + $0x220] sm:$0xff]  ;;  %v2691_v57 = vcombine.low %v539_v50, %v541_v51  ;;  %v583_v51 = vld [vmem:[%s3776_s27 + $0x348] sm:$0xff] }
  0xf5   : > { %1046 = vmatprep.subr.bf16.mxu1 %v2698_v58  ;;  %v2714_v10 = vcombine.high %v562_v7, %v564_v8  ;;  %v566_v11 = vld [vmem:[%s3776_s27 + $0x240] sm:$0xff]  ;;  %v2713_v13 = vcombine.low %v562_v7, %v564_v8  ;;  %v3826_v58 = vld [vmem:[#allocation2 + $0x28] sm:$0xff] }
  0xf6   : > { %v568_v12 = vld [vmem:[%s3776_s27 + $0x260] sm:$0xff]  ;;  %v557_v7 = vld [vmem:[%s3776_s27 + $0x1a8] sm:$0xff] }
  0xf7   : > { %v2718_v14 = vcombine.high %v566_v11, %v568_v12  ;;  %v570_v15 = vld [vmem:[%s3776_s27 + $0x280] sm:$0xff]  ;;  %v2717_v17 = vcombine.low %v566_v11, %v568_v12  ;;  %v561_v11 = vld [vmem:[%s3776_s27 + $0x1e8] sm:$0xff]  ;;  %v3844_v12 = vld [vmem:[#allocation2 + $0x30] sm:$0xff] }
  0xf8   : > { %1047 = vmatpush1.bf16.msra.mxu1 %v2697_v61  ;;  %v572_v16 = vld [vmem:[%s3776_s27 + $0x2a0] sm:$0xff]  ;;  %v549_v61 = vld [vmem:[%s3776_s27 + $0x128] sm:$0xff] }
  0xf9   : > { %1048 = vmatprep.subr.bf16.mxu1 %v2702_v62  ;;  %v2722_v18 = vcombine.high %v570_v15, %v572_v16  ;;  %v574_v19 = vld [vmem:[%s3776_s27 + $0x2c0] sm:$0xff]  ;;  %v2721_v21 = vcombine.low %v570_v15, %v572_v16  ;;  %v2695_v62 = vcombine.low %v543_v54, %v545_v55  ;;  %v2700_v63 = vcombine.high %v547_v60, %v549_v61  ;;  %v563_v16 = vld [vmem:[%s3776_s27 + $0x208] sm:$0xff] }
  0xfa   : > { %v576_v20 = vld [vmem:[%s3776_s27 + $0x2e0] sm:$0xff]  ;;  %v2699_v3 = vcombine.low %v547_v60, %v549_v61  ;;  %v587_v60 = vld [vmem:[%s3776_s27 + $0x388] sm:$0xff] }
  0xfb   : > { %v2726_v22 = vcombine.high %v574_v19, %v576_v20  ;;  %v578_v23 = vld [vmem:[%s3776_s27 + $0x300] sm:$0xff]  ;;  %v2725_v25 = vcombine.low %v574_v19, %v576_v20  ;;  %v567_v19 = vld [vmem:[%s3776_s27 + $0x248] sm:$0xff] }
  0xfc   : > { %1049 = vmatpush1.bf16.msra.mxu1 %v2701_v1  ;;  %v580_v24 = vld [vmem:[%s3776_s27 + $0x320] sm:$0xff]  ;;  %v553_v1 = vld [vmem:[%s3776_s27 + $0x168] sm:$0xff] }
  0xfd   : > { %1050 = vmatprep.subr.bf16.mxu1 %v2706_v2  ;;  %v2730_v26 = vcombine.high %v578_v23, %v580_v24  ;;  %v582_v27 = vld [vmem:[%s3776_s27 + $0x340] sm:$0xff]  ;;  %v2729_v29 = vcombine.low %v578_v23, %v580_v24  ;;  %v2703_v8 = vcombine.low %v551_v0, %v553_v1  ;;  %v569_v20 = vld [vmem:[%s3776_s27 + $0x268] sm:$0xff] }
  0xfe   : > { %v584_v28 = vld [vmem:[%s3776_s27 + $0x360] sm:$0xff]  ;;  %v589_v61 = vld [vmem:[%s3776_s27 + $0x3a8] sm:$0xff] }
  0xff   : > { %v2734_v30 = vcombine.high %v582_v27, %v584_v28  ;;  %v586_v31 = vld [vmem:[%s3776_s27 + $0x380] sm:$0xff]  ;;  %v2733_v33 = vcombine.low %v582_v27, %v584_v28  ;;  %v571_v27 = vld [vmem:[%s3776_s27 + $0x288] sm:$0xff] }
 0x100   : > { %1051 = vmatpush1.bf16.msra.mxu1 %v2705_v5  ;;  %v588_v32 = vld [vmem:[%s3776_s27 + $0x3a0] sm:$0xff]  ;;  %v2704_v5 = vcombine.high %v551_v0, %v553_v1  ;;  %v573_v28 = vld [vmem:[%s3776_s27 + $0x2a8] sm:$0xff]  ;;  %v3018_v0 = vld [vmem:[%s3856_s5 + $0x50] ss:$8 sps:$4 sm:$0xff]  }
 0x101   : > { %1052 = vmatprep.subr.bf16.mxu1 %v2710_v6  ;;  %v2738_v34 = vcombine.high %v586_v31, %v588_v32  ;;  %v590_v35 = vld [vmem:[%s3776_s27 + $0x3c0] sm:$0xff]  ;;  %v2737_v37 = vcombine.low %v586_v31, %v588_v32  ;;  %v555_v6 = vld [vmem:[%s3776_s27 + $0x188] sm:$0xff]  ;;  %v3006_v31 = vld [vmem:[%s3856_s5 + $0x10] ss:$8 sps:$4 sm:$0xff]   ;;  %v2723_v41 = vcombine.low %v571_v27, %v573_v28 }
 0x102   : > { %v592_v36 = vld [vmem:[%s3776_s27 + $0x3e0] sm:$0xff] }
 0x103   : > { %v2742_v38 = vcombine.high %v590_v35, %v592_v36  ;;  %v2741_v42 = vcombine.low %v590_v35, %v592_v36  ;;  %v3814_v46 = vld [vmem:[#allocation2] sm:$0xff]  ;;  %v577_v35 = vld [vmem:[%s3776_s27 + $0x2e8] sm:$0xff] }
 0x104   : > { %1053 = vmatpush1.bf16.msra.mxu1 %v2709_v9  ;;  %v3834_v2 = vld [vmem:[#allocation2 + $0x20] sm:$0xff]  ;;  %v2708_v9 = vcombine.high %v555_v6, %v557_v7 }
 0x105   : > { %1054 = vmatprep.subr.bf16.mxu1 %v2714_v10  ;;  %v559_v10 = vld [vmem:[%s3776_s27 + $0x1c8] sm:$0xff]  ;;  %v3860_v24 = vld [vmem:[#allocation2 + $0x40] sm:$0xff] }
 0x106   : > { %v2712_v15 = vcombine.high %v559_v10, %v561_v11  ;;  %v3003_v23 = vld [vmem:[%s3856_s5] ss:$8 sps:$4 sm:$0xff]   ;;  %v3007_v32 = vld [vmem:[%s3856_s5 + $0x24] ss:$8 sps:$4 sm:$0xff]  }
 0x107   : > { %v3009_v36 = vld [vmem:[%s3856_s5 + $0x20] ss:$8 sps:$4 sm:$0xff]   ;;  %v3019_v1 = vld [vmem:[%s3856_s5 + $0x64] ss:$8 sps:$4 sm:$0xff]  }
 0x108   : > { %1055 = vmatpush1.bf16.msra.mxu1 %v2713_v13  ;;  %v2707_v13 = vcombine.low %v555_v6, %v557_v7  ;;  %v3888_v55 = vld [vmem:[#allocation2 + $0x60] sm:$0xff]  ;;  %v591_v6 = vld [vmem:[%s3776_s27 + $0x3c8] sm:$0xff] }
 0x109   : > { %1056 = vmatprep.subr.bf16.mxu1 %v2718_v14  ;;  %v3846_v14 = vld [vmem:[#allocation2 + $0x48] sm:$0xff] }
 0x10a   : > { %v593_v7 = vld [vmem:[%s3776_s27 + $0x3e8] sm:$0xff] }
 0x10c   : > { %1057 = vmatpush1.bf16.msra.mxu1 %v2717_v17  ;;  %v565_v17 = vld [vmem:[%s3776_s27 + $0x228] sm:$0xff] }
 0x10d   : > { %1058 = vmatprep.subr.bf16.mxu1 %v2722_v18  ;;  %v2711_v18 = vcombine.low %v559_v10, %v561_v11  ;;  %v2739_v10 = vcombine.low %v587_v60, %v589_v61  ;;  %v3904_v11 = vld [vmem:[#allocation2 + $0x88] sm:$0xff] }
 0x110   : > { %1059 = vmatpush1.bf16.msra.mxu1 %v2721_v21  ;;  %v3001_v21 = vld [vmem:[%s3856_s5 + $0x4] ss:$8 sps:$4 sm:$0xff]  }
 0x111   : > { %1060 = vmatprep.subr.bf16.mxu1 %v2726_v22  ;;  %v2716_v22 = vcombine.high %v563_v16, %v565_v17  ;;  %2000 = vmatprep.subr.bf16.mxu0 %v3001_v21  ;;  %v3914_v21 = vld [vmem:[#allocation2 + $0x98] sm:$0xff] }
 0x112   : > { %2001 = vmatpush1.bf16.msra.mxu0 %v3003_v23  ;;  %v3030_v23 = vld [vmem:[%s3856_s5 + $0x90] ss:$8 sps:$4 sm:$0xff]  }
 0x114   : > { %1061 = vmatpush1.bf16.msra.mxu1 %v2725_v25  ;;  %v3862_v25 = vld [vmem:[#allocation2 + $0x58] sm:$0xff] }
 0x115   : > { %1062 = vmatprep.subr.bf16.mxu1 %v2730_v26  ;;  %v2715_v26 = vcombine.low %v563_v16, %v565_v17  ;;  %v3024_v16 = vld [vmem:[%s3856_s5 + $0x70] ss:$8 sps:$4 sm:$0xff]   ;;  %v3025_v17 = vld [vmem:[%s3856_s5 + $0x84] ss:$8 sps:$4 sm:$0xff]  }
 0x118   : > { %1063 = vmatpush1.bf16.msra.mxu1 %v2729_v29  ;;  %v2720_v29 = vcombine.high %v567_v19, %v569_v20 }
 0x119   : > { %1064 = vmatprep.subr.bf16.mxu1 %v2734_v30  ;;  %v3004_v30 = vld [vmem:[%s3856_s5 + $0x14] ss:$8 sps:$4 sm:$0xff]  }
 0x11a   : > { %2002 = vmatprep.subr.bf16.mxu0 %v3004_v30  ;;  %v3034_v30 = vld [vmem:[%s3856_s5 + $0xb4] ss:$8 sps:$4 sm:$0xff]  }
 0x11b   : > { %2003 = vmatpush1.bf16.msra.mxu0 %v3006_v31  ;;  %v3036_v31 = vld [vmem:[%s3856_s5 + $0xb0] ss:$8 sps:$4 sm:$0xff]  }
 0x11c   : > { %1065 = vmatpush1.bf16.msra.mxu1 %v2733_v33  ;;  %v2719_v33 = vcombine.low %v567_v19, %v569_v20  ;;  %2004 = vmatprep.subr.bf16.mxu0 %v3007_v32  ;;  %v3027_v19 = vld [vmem:[%s3856_s5 + $0x80] ss:$8 sps:$4 sm:$0xff]   ;;  %v3037_v32 = vld [vmem:[%s3856_s5 + $0xc4] ss:$8 sps:$4 sm:$0xff]  }
 0x11d   : > { %1066 = vmatprep.subr.bf16.mxu1 %v2738_v34  ;;  %v575_v34 = vld [vmem:[%s3776_s27 + $0x2c8] sm:$0xff]  ;;  %v3912_v20 = vld [vmem:[#allocation2 + $0x80] sm:$0xff] }
 0x11e   : > { %v2728_v44 = vcombine.high %v575_v34, %v577_v35  ;;  %v2727_v50 = vcombine.low %v575_v34, %v577_v35  ;;  %v3932_v34 = vld [vmem:[#allocation2 + $0xa0] sm:$0xff]  ;;  %v3934_v35 = vld [vmem:[#allocation2 + $0xb8] sm:$0xff] }
 0x11f   : > { %2005 = vmatpush1.bf16.msra.mxu0 %v3009_v36  ;;  %v3040_v36 = vld [vmem:[%s3856_s5 + $0xd4] ss:$8 sps:$4 sm:$0xff]  }
 0x120   : > { %1067 = vmatpush1.bf16.msra.mxu1 %v2737_v37  ;;  %v2724_v37 = vcombine.high %v571_v27, %v573_v28  ;;  %2006 = vmatprep.subr.bf16.mxu0 %v3010_v45  ;;  %v3033_v27 = vld [vmem:[%s3856_s5 + $0xa0] ss:$8 sps:$4 sm:$0xff]   ;;  %v3922_v28 = vld [vmem:[#allocation2 + $0x90] sm:$0xff] }
 0x121   : > { %1068 = vmatprep.subr.bf16.mxu1 %v2742_v38  ;;  %v3874_v38 = vld [vmem:[#allocation2 + $0x50] sm:$0xff] }
 0x122   : > { %v3046_v45 = vld [vmem:[%s3856_s5 + $0xf4] ss:$8 sps:$4 sm:$0xff]  }
 0x124   : > { %1069 = vmatpush1.bf16.msra.mxu1 %v2741_v42  ;;  %v579_v42 = vld [vmem:[%s3776_s27 + $0x308] sm:$0xff] }
 0x125   : > { %1231 = vmatprep.subr.bf16.mxu1 %v2684_v43  ;;  %v581_v43 = vld [vmem:[%s3776_s27 + $0x328] sm:$0xff] }
 0x126   : > { %v2732_v54 = vcombine.high %v579_v42, %v581_v43 }
 0x127   : > { %1071 = vmatmul.mubr.bf16.vlgmr.msra.gmra.mrb[0].mxu1 %v3814_v46 }
 0x128   : > { %1232 = vmatpush1.bf16.msra.mxu1 %v2683_v47  ;;  %1080 = vmatprep.mubr.bf16.mxu1 %v3816_v48  ;;  %v3012_v47 = vld [vmem:[%s3856_s5 + $0x30] ss:$8 sps:$4 sm:$0xff]  }
 0x129   : > { %1233 = vmatprep.subr.bf16.mxu1 %v2688_v49  ;;  %v3013_v49 = vld [vmem:[%s3856_s5 + $0x44] ss:$8 sps:$4 sm:$0xff]   ;;  %2007 = vmatpush1.bf16.msra.mxu0 %v3012_v47  ;;  %v3048_v47 = vld [vmem:[%s3856_s5 + $0xf0] ss:$8 sps:$4 sm:$0xff]  }
 0x12a   : > { %2008 = vmatprep.subr.bf16.mxu0 %v3013_v49  ;;  %v3950_v49 = vld [vmem:[#allocation2 + $0xc0] sm:$0xff] }
 0x12c   : > { %1234 = vmatpush1.bf16.msra.mxu1 %v2687_v52  ;;  %v585_v52 = vld [vmem:[%s3776_s27 + $0x368] sm:$0xff] }
 0x12d   : > { %1235 = vmatprep.subr.bf16.mxu1 %v2692_v53  ;;  %v3015_v53 = vld [vmem:[%s3856_s5 + $0x40] ss:$8 sps:$4 sm:$0xff]  }
 0x12e   : > { %2009 = vmatpush1.bf16.msra.mxu0 %v3015_v53  ;;  %v3959_v53 = vld [vmem:[#allocation2 + $0xe8] sm:$0xff] }
 0x12f   : > { %1081 = vmatmul.mubr.bf16.gmra.mrb[4].mxu1 %v3824_v56 }
 0x130   : > { %1090 = vmatprep.mubr.bf16.mxu1 %v3826_v58  ;;  %1236 = vmatpush1.bf16.msra.mxu1 %v2691_v57  ;;  %v3890_v57 = vld [vmem:[#allocation2 + $0x78] sm:$0xff] }
 0x131   : > { %1237 = vmatprep.subr.bf16.mxu1 %v2696_v59  ;;  %v2731_v59 = vcombine.low %v579_v42, %v581_v43  ;;  %v3941_v42 = vld [vmem:[#allocation2 + $0xb0] sm:$0xff]  ;;  %v3045_v43 = vld [vmem:[%s3856_s5 + $0xe0] ss:$8 sps:$4 sm:$0xff]  }
 0x134   : > { %1238 = vmatpush1.bf16.msra.mxu1 %v2695_v62  ;;  %v2736_v62 = vcombine.high %v583_v51, %v585_v52 }
 0x135   : > { %1239 = vmatprep.subr.bf16.mxu1 %v2700_v63  ;;  %v3016_v63 = vld [vmem:[%s3856_s5 + $0x54] ss:$8 sps:$4 sm:$0xff]  }
 0x136   : > { %2010 = vmatprep.subr.bf16.mxu0 %v3016_v63 }
 0x137   : > { %1091 = vmatmul.mubr.bf16.gmra.mrb[8].mxu1 %v3834_v2  ;;  %2011 = vmatpush1.bf16.msra.mxu0 %v3018_v0 }
 0x138   : > { %1100 = vmatprep.mubr.bf16.mxu1 %v3836_v4  ;;  %1240 = vmatpush1.bf16.msra.mxu1 %v2699_v3  ;;  %v2735_v3 = vcombine.low %v583_v51, %v585_v52  ;;  %v3051_v51 = vld [vmem:[%s3856_s5 + $0x104] ss:$8 sps:$4 sm:$0xff]   ;;  %v3957_v52 = vld [vmem:[#allocation2 + $0xd0] sm:$0xff] }
 0x139   : > { %1241 = vmatprep.subr.bf16.mxu1 %v2704_v5  ;;  %v2740_v5 = vcombine.high %v587_v60, %v589_v61  ;;  %2012 = vmatprep.subr.bf16.mxu0 %v3019_v1  ;;  %v3969_v60 = vld [vmem:[#allocation2 + $0xf0] sm:$0xff] }
 0x13c   : > { %1242 = vmatpush1.bf16.msra.mxu1 %v2703_v8  ;;  %v3021_v8 = vld [vmem:[%s3856_s5 + $0x60] ss:$8 sps:$4 sm:$0xff]  }
 0x13d   : > { %1243 = vmatprep.subr.bf16.mxu1 %v2708_v9  ;;  %v3902_v9 = vld [vmem:[#allocation2 + $0x70] sm:$0xff]  ;;  %2013 = vmatpush1.bf16.msra.mxu0 %v3021_v8 }
 0x13f   : > { %1101 = vmatmul.mubr.bf16.gmra.mrb[12].mxu1 %v3844_v12 }
 0x140   : > { %1110 = vmatprep.mubr.bf16.mxu1 %v3846_v14  ;;  %1244 = vmatpush1.bf16.msra.mxu1 %v2707_v13  ;;  %v2744_v13 = vcombine.high %v591_v6, %v593_v7 }
 0x141   : > { %1245 = vmatprep.subr.bf16.mxu1 %v2712_v15  ;;  %v3022_v15 = vld [vmem:[%s3856_s5 + $0x74] ss:$8 sps:$4 sm:$0xff]  }
 0x142   : > { %2014 = vmatprep.subr.bf16.mxu0 %v3022_v15 }
 0x143   : > { %2015 = vmatpush1.bf16.msra.mxu0 %v3024_v16 }
 0x144   : > { %1246 = vmatpush1.bf16.msra.mxu1 %v2711_v18  ;;  %v2743_v18 = vcombine.low %v591_v6, %v593_v7  ;;  %2016 = vmatprep.subr.bf16.mxu0 %v3025_v17  ;;  %v3049_v6 = vld [vmem:[%s3856_s5 + $0x100] ss:$8 sps:$4 sm:$0xff]   ;;  %v3052_v17 = vld [vmem:[%s3856_s5 + $0x110] ss:$8 sps:$4 sm:$0xff]  }
 0x145   : > { %1247 = vmatprep.subr.bf16.mxu1 %v2716_v22  ;;  %v3028_v22 = vld [vmem:[%s3856_s5 + $0x94] ss:$8 sps:$4 sm:$0xff]  }
 0x147   : > { %1111 = vmatmul.mubr.bf16.gmra.mrb[16].mxu1 %v3860_v24  ;;  %2017 = vmatpush1.bf16.msra.mxu0 %v3027_v19 }
 0x148   : > { %1120 = vmatprep.mubr.bf16.mxu1 %v3862_v25  ;;  %1248 = vmatpush1.bf16.msra.mxu1 %v2715_v26  ;;  %v3031_v26 = vld [vmem:[%s3856_s5 + $0xa4] ss:$8 sps:$4 sm:$0xff]  }
 0x149   : > { %1249 = vmatprep.subr.bf16.mxu1 %v2720_v29  ;;  %2018 = vmatprep.subr.bf16.mxu0 %v3028_v22  ;;  %v3924_v29 = vld [vmem:[#allocation2 + $0xa8] sm:$0xff] }
 0x14b   : > { %2019 = vmatpush1.bf16.msra.mxu0 %v3030_v23 }
 0x14c   : > { %1250 = vmatpush1.bf16.msra.mxu1 %v2719_v33  ;;  %2020 = vmatprep.subr.bf16.mxu0 %v3031_v26  ;;  %v3039_v33 = vld [vmem:[%s3856_s5 + $0xc0] ss:$8 sps:$4 sm:$0xff]  }
 0x14d   : > { %1251 = vmatprep.subr.bf16.mxu1 %v2724_v37  ;;  %v3042_v37 = vld [vmem:[%s3856_s5 + $0xd0] ss:$8 sps:$4 sm:$0xff]  }
 0x14f   : > { %1121 = vmatmul.mubr.bf16.gmra.mrb[20].mxu1 %v3874_v38  ;;  %2021 = vmatpush1.bf16.msra.mxu0 %v3033_v27 }
 0x150   : > { %1130 = vmatprep.mubr.bf16.mxu1 %v3876_v40  ;;  %1252 = vmatpush1.bf16.msra.mxu1 %v2723_v41  ;;  %v3043_v41 = vld [vmem:[%s3856_s5 + $0xe4] ss:$8 sps:$4 sm:$0xff]  }
 0x151   : > { %1253 = vmatprep.subr.bf16.mxu1 %v2728_v44  ;;  %2022 = vmatprep.subr.bf16.mxu0 %v3034_v30  ;;  %v3944_v44 = vld [vmem:[#allocation2 + $0xc8] sm:$0xff] }
 0x153   : > { %2023 = vmatpush1.bf16.msra.mxu0 %v3036_v31  ;;  %v3060_v31 = vld [vmem:[%s3856_s5 + $0x134] ss:$8 sps:$4 sm:$0xff]  }
 0x154   : > { %1254 = vmatpush1.bf16.msra.mxu1 %v2727_v50  ;;  %2024 = vmatprep.subr.bf16.mxu0 %v3037_v32  ;;  %v3952_v50 = vld [vmem:[#allocation2 + $0xd8] sm:$0xff] }
 0x155   : > { %1255 = vmatprep.subr.bf16.mxu1 %v2732_v54  ;;  %v3963_v54 = vld [vmem:[#allocation2 + $0xe0] sm:$0xff] }
 0x157   : > { %1131 = vmatmul.mubr.bf16.gmra.mrb[24].mxu1 %v3888_v55  ;;  %2025 = vmatpush1.bf16.msra.mxu0 %v3039_v33 }
 0x158   : > { %1140 = vmatprep.mubr.bf16.mxu1 %v3890_v57  ;;  %1256 = vmatpush1.bf16.msra.mxu1 %v2731_v59  ;;  %v3965_v59 = vld [vmem:[#allocation2 + $0xf8] sm:$0xff] }
 0x159   : > { %1257 = vmatprep.subr.bf16.mxu1 %v2736_v62  ;;  %2026 = vmatprep.subr.bf16.mxu0 %v3040_v36 }
 0x15b   : > { %2027 = vmatpush1.bf16.msra.mxu0 %v3042_v37  ;;  %v3058_v37 = vld [vmem:[%s3856_s5 + $0x130] ss:$8 sps:$4 sm:$0xff]  }
 0x15c   : > { %1258 = vmatpush1.bf16.msra.mxu1 %v2735_v3  ;;  %2028 = vmatprep.subr.bf16.mxu0 %v3043_v41 }
 0x15d   : > { %1259 = vmatprep.subr.bf16.mxu1 %v2740_v5 }
 0x15f   : > { %1141 = vmatmul.mubr.bf16.gmra.mrb[28].mxu1 %v3902_v9  ;;  %2029 = vmatpush1.bf16.msra.mxu0 %v3045_v43  ;;  %v3063_v43 = vld [vmem:[%s3856_s5 + $0x144] ss:$8 sps:$4 sm:$0xff]  }
 0x160   : > { %1150 = vmatprep.mubr.bf16.mxu1 %v3904_v11  ;;  %1260 = vmatpush1.bf16.msra.mxu1 %v2739_v10 }
 0x161   : > { %1261 = vmatprep.subr.bf16.mxu1 %v2744_v13  ;;  %2030 = vmatprep.subr.bf16.mxu0 %v3046_v45 }
 0x163   : > { %2031 = vmatpush1.bf16.msra.mxu0 %v3048_v47 }
 0x164   : > { %1262 = vmatpush1.bf16.msra.mxu1 %v2743_v18  ;;  %2193 = vmatprep.subr.bf16.mxu0 %v3051_v51  ;;  %v3061_v51 = vld [vmem:[%s3856_s5 + $0x140] ss:$8 sps:$4 sm:$0xff]  }
 0x167   : > { %1151 = vmatmul.mubr.bf16.gmra.mrb[32].mxu1 %v3912_v20 }
 0x168   : > { %1160 = vmatprep.mubr.bf16.mxu1 %v3914_v21 }
 0x16f   : > { %1161 = vmatmul.mubr.bf16.gmra.mrb[36].mxu1 %v3922_v28 }
 0x170   : > { %1170 = vmatprep.mubr.bf16.mxu1 %v3924_v29 }
 0x177   : > { %1171 = vmatmul.mubr.bf16.gmra.mrb[40].mxu1 %v3932_v34 }
 0x178   : > { %1180 = vmatprep.mubr.bf16.mxu1 %v3934_v35 }
 0x17f   : > { %1181 = vmatmul.mubr.bf16.gmra.mrb[44].mxu1 %v3941_v42 }
 0x180   : > { %1190 = vmatprep.mubr.bf16.mxu1 %v3944_v44 }
 0x187   : > { %1191 = vmatmul.mubr.bf16.gmra.mrb[48].mxu1 %v3950_v49 }
 0x188   : > { %1200 = vmatprep.mubr.bf16.mxu1 %v3952_v50 }
 0x18f   : > { %1201 = vmatmul.mubr.bf16.gmra.mrb[52].mxu1 %v3957_v52 }
 0x190   : > { %1210 = vmatprep.mubr.bf16.mxu1 %v3959_v53 }
 0x197   : > { %1211 = vmatmul.mubr.bf16.gmra.mrb[56].mxu1 %v3963_v54 }
 0x198   : > { %1220 = vmatprep.mubr.bf16.mxu1 %v3965_v59 }
 0x19f   : > { %1221 = vmatmul.mubr.bf16.gmra.mrb[60].mxu1 %v3969_v60 }
 0x1a0   : > { %1263 = vmatprep.mubr.bf16.mxu1 %v3768_v39  ;;  %v698_v39 = vlaneseq }
 0x1a7   : > { %1264 = vmatmul.mubr.bf16.vlgmr.msra.gmra.mrb[64].mxu1 %v3814_v46  ;;  %v3992_v46 = vshrl.u32 %v698_v39, 7 }
 0x1a8   : > { %1273 = vmatprep.mubr.bf16.mxu1 %v3816_v48 }
 0x1a9   : > { %v700_v48 = vsub.s32 0, %v3992_v46 }
 0x1af   : > { %1274 = vmatmul.mubr.bf16.gmra.mrb[68].mxu1 %v3824_v56  ;;  %v3997_v56 = vld [vmem:[%s594_s21] sm:$0xf] }
 0x1b0   : > { %1283 = vmatprep.mubr.bf16.mxu1 %v3826_v58  ;;  %v704_v58 = vsub.s32 1, %v3992_v46 }
 0x1b7   : > { %1284 = vmatmul.mubr.bf16.gmra.mrb[72].mxu1 %v3834_v2  ;;  %v4002_v2 = vrot.slane %v3997_v56, %v700_v48 }
 0x1b8   : > { %1293 = vmatprep.mubr.bf16.mxu1 %v3836_v4  ;;  %v4005_v4 = vrot.slane %v3997_v56, %v704_v58  ;;  %v3066_v58 = vld [vmem:[%s3856_s5 + $0x154] ss:$8 sps:$4 sm:$0xff]  }
 0x1bf   : > { %1294 = vmatmul.mubr.bf16.gmra.mrb[76].mxu1 %v3844_v12 }
 0x1c0   : > { %1303 = vmatprep.mubr.bf16.mxu1 %v3846_v14 }
 0x1c7   : > { %1304 = vmatmul.mubr.bf16.gmra.mrb[80].mxu1 %v3860_v24 }
 0x1c8   : > { %1313 = vmatprep.mubr.bf16.mxu1 %v3862_v25 }
 0x1cf   : > { %1314 = vmatmul.mubr.bf16.gmra.mrb[84].mxu1 %v3874_v38 }
 0x1d0   : > { %1323 = vmatprep.mubr.bf16.mxu1 %v3876_v40 }
 0x1d7   : > { %1324 = vmatmul.mubr.bf16.gmra.mrb[88].mxu1 %v3888_v55 }
 0x1d8   : > { %1333 = vmatprep.mubr.bf16.mxu1 %v3890_v57 }
 0x1df   : > { %1334 = vmatmul.mubr.bf16.gmra.mrb[92].mxu1 %v3902_v9  ;;  %v3054_v9 = vld [vmem:[%s3856_s5 + $0x114] ss:$8 sps:$4 sm:$0xff]  }
 0x1e0   : > { %1343 = vmatprep.mubr.bf16.mxu1 %v3904_v11 }
 0x1e7   : > { %1344 = vmatmul.mubr.bf16.gmra.mrb[96].mxu1 %v3912_v20  ;;  %v3057_v20 = vld [vmem:[%s3856_s5 + $0x124] ss:$8 sps:$4 sm:$0xff]  }
 0x1e8   : > { %1353 = vmatprep.mubr.bf16.mxu1 %v3914_v21 }
 0x1ef   : > { %1354 = vmatmul.mubr.bf16.gmra.mrb[100].mxu1 %v3922_v28  ;;  %v3055_v28 = vld [vmem:[%s3856_s5 + $0x120] ss:$8 sps:$4 sm:$0xff]  }
 0x1f0   : > { %1363 = vmatprep.mubr.bf16.mxu1 %v3924_v29 }
 0x1f7   : > { %1364 = vmatmul.mubr.bf16.gmra.mrb[104].mxu1 %v3932_v34 }
 0x1f8   : > { %1373 = vmatprep.mubr.bf16.mxu1 %v3934_v35 }
 0x1fa   : > { %v1072_v12 = vpop.f32.mrb[0].mxu1 }
 0x1fb   : > { %v1073_v14 = vadd.f32 %v1072_v12, %v4002_v2  ;;  %v1074_v24 = vpop.f32.mrb[1].mxu1 }
 0x1fc   : > { %v1075_v25 = vadd.f32 %v1074_v24, %v4005_v4  ;;  %v1076_v38 = vpop.f32.mrb[2].mxu1 }
 0x1fd   : > { %v1077_v40 = vadd.f32 %v1076_v38, %v4002_v2  ;;  %v1078_v55 = vpop.f32.mrb[3].mxu1  ;;  %v1424_v61 = vmax.f32 %v1073_v14, 0.0 }
 0x1fe   : > { %v1079_v57 = vadd.f32 %v1078_v55, %v4005_v4  ;;  %v1425_v63 = vmax.f32 %v1075_v25, 0.0  ;;  %v3064_v25 = vld [vmem:[%s3856_s5 + $0x150] ss:$8 sps:$4 sm:$0xff]   ;;  %v3069_v55 = vld [vmem:[%s3856_s5 + $0x164] ss:$8 sps:$4 sm:$0xff]  }
 0x1ff   : > { %v1428_v62 = vmax.f32 %v1077_v40, 0.0  ;;  %1374 = vmatmul.mubr.bf16.gmra.mrb[108].mxu1 %v3941_v42 }
 0x200   : > { %v1429_v0 = vmax.f32 %v1079_v57, 0.0  ;;  %1383 = vmatprep.mubr.bf16.mxu1 %v3944_v44 }
 0x201   : > { %v1616_v1 = vpack.c.bf16 %v1428_v62, %v1424_v61 }
 0x202   : > { %v1082_v3 = vpop.f32.mrb[4].mxu1  ;;  %v1617_v5 = vpack.c.bf16 %v1429_v0, %v1425_v63 }
 0x203   : > { %v1083_v7 = vadd.f32 %v1082_v3, %v4002_v2  ;;  %v1084_v8 = vpop.f32.mrb[5].mxu1 }
 0x204   : > { %v1085_v10 = vadd.f32 %v1084_v8, %v4005_v4  ;;  %v1086_v11 = vpop.f32.mrb[6].mxu1  ;;  %2032 = vmatprep.mubr.bf16.mxu0 %v1617_v5 }
 0x205   : > { %v1087_v13 = vadd.f32 %v1086_v11, %v4002_v2  ;;  %v1088_v15 = vpop.f32.mrb[7].mxu1  ;;  %2033 = vmatmul.mubr.bf16.vlgmr.msra.gmra.mrb[0].mxu0 %v1616_v1  ;;  %v1432_v18 = vmax.f32 %v1083_v7, 0.0  ;;  %v3067_v1 = vld [vmem:[%s3856_s5 + $0x160] ss:$8 sps:$4 sm:$0xff]  }
 0x206   : > { %v1089_v16 = vadd.f32 %v1088_v15, %v4005_v4  ;;  %2194 = vmatpush1.bf16.msra.mxu0 %v3049_v6  ;;  %v1433_v21 = vmax.f32 %v1085_v10, 0.0  ;;  %v3072_v6 = vld [vmem:[%s3856_s5 + $0x174] ss:$8 sps:$4 sm:$0xff]   ;;  %v3070_v10 = vld [vmem:[%s3856_s5 + $0x170] ss:$8 sps:$4 sm:$0xff]  }
 0x207   : > { %v1436_v19 = vmax.f32 %v1087_v13, 0.0  ;;  %1384 = vmatmul.mubr.bf16.gmra.mrb[112].mxu1 %v3950_v49  ;;  %2195 = vmatprep.subr.bf16.mxu0 %v3054_v9  ;;  %v3075_v15 = vld [vmem:[%s3856_s5 + $0x184] ss:$8 sps:$4 sm:$0xff]  }
 0x208   : > { %v1437_v22 = vmax.f32 %v1089_v16, 0.0  ;;  %1393 = vmatprep.mubr.bf16.mxu1 %v3952_v50 }
 0x209   : > { %v1620_v23 = vpack.c.bf16 %v1436_v19, %v1432_v18 }
 0x20a   : > { %v1621_v26 = vpack.c.bf16 %v1437_v22, %v1433_v21  ;;  %v1092_v27 = vpop.f32.mrb[8].mxu1  ;;  %2196 = vmatpush1.bf16.msra.mxu0 %v3052_v17  ;;  %v3073_v21 = vld [vmem:[%s3856_s5 + $0x180] ss:$8 sps:$4 sm:$0xff]  }
 0x20b   : > { %v1093_v29 = vadd.f32 %v1092_v27, %v4002_v2  ;;  %v1094_v30 = vpop.f32.mrb[9].mxu1  ;;  %2197 = vmatprep.subr.bf16.mxu0 %v3057_v20 }
 0x20c   : > { %v1095_v32 = vadd.f32 %v1094_v30, %v4005_v4  ;;  %v1096_v33 = vpop.f32.mrb[10].mxu1  ;;  %2042 = vmatprep.mubr.bf16.mxu0 %v1621_v26  ;;  %v3078_v26 = vld [vmem:[%s3856_s5 + $0x194] ss:$8 sps:$4 sm:$0xff]  }
 0x20d   : > { %v1097_v34 = vadd.f32 %v1096_v33, %v4002_v2  ;;  %v1098_v35 = vpop.f32.mrb[11].mxu1  ;;  %2043 = vmatmul.mubr.bf16.gmra.mrb[4].mxu0 %v1620_v23  ;;  %v1440_v41 = vmax.f32 %v1093_v29, 0.0 }
 0x20e   : > { %v1099_v36 = vadd.f32 %v1098_v35, %v4005_v4  ;;  %2198 = vmatpush1.bf16.msra.mxu0 %v3055_v28  ;;  %v1441_v44 = vmax.f32 %v1095_v32, 0.0 }
 0x20f   : > { %v1444_v42 = vmax.f32 %v1097_v34, 0.0  ;;  %1394 = vmatmul.mubr.bf16.gmra.mrb[116].mxu1 %v3957_v52  ;;  %2199 = vmatprep.subr.bf16.mxu0 %v3060_v31  ;;  %v3076_v31 = vld [vmem:[%s3856_s5 + $0x190] ss:$8 sps:$4 sm:$0xff]   ;;  %v3081_v34 = vld [vmem:[%s3856_s5 + $0x1a4] ss:$8 sps:$4 sm:$0xff]  }
 0x210   : > { %v1445_v45 = vmax.f32 %v1099_v36, 0.0  ;;  %1403 = vmatprep.mubr.bf16.mxu1 %v3959_v53 }
 0x211   : > { %v1624_v47 = vpack.c.bf16 %v1444_v42, %v1440_v41 }
 0x212   : > { %v1625_v49 = vpack.c.bf16 %v1445_v45, %v1441_v44  ;;  %v1102_v50 = vpop.f32.mrb[12].mxu1  ;;  %2200 = vmatpush1.bf16.msra.mxu0 %v3058_v37 }
 0x213   : > { %v1103_v39 = vadd.f32 %v1102_v50, %v4002_v2  ;;  %v1104_v48 = vpop.f32.mrb[13].mxu1  ;;  %2201 = vmatprep.subr.bf16.mxu0 %v3063_v43  ;;  %v3079_v43 = vld [vmem:[%s3856_s5 + $0x1a0] ss:$8 sps:$4 sm:$0xff]  }
 0x214   : > { %v1105_v52 = vadd.f32 %v1104_v48, %v4005_v4  ;;  %v1106_v12 = vpop.f32.mrb[14].mxu1  ;;  %2052 = vmatprep.mubr.bf16.mxu0 %v1625_v49 }
 0x215   : > { %v1107_v14 = vadd.f32 %v1106_v12, %v4002_v2  ;;  %v1108_v24 = vpop.f32.mrb[15].mxu1  ;;  %2053 = vmatmul.mubr.bf16.gmra.mrb[8].mxu0 %v1624_v47  ;;  %v1448_v38 = vmax.f32 %v1103_v39, 0.0  ;;  %v3084_v47 = vld [vmem:[%s3856_s5 + $0x1b4] ss:$8 sps:$4 sm:$0xff]  }
 0x216   : > { %v1109_v53 = vadd.f32 %v1108_v24, %v4005_v4  ;;  %2202 = vmatpush1.bf16.msra.mxu0 %v3061_v51  ;;  %v1449_v57 = vmax.f32 %v1105_v52, 0.0 }
 0x217   : > { %v1452_v40 = vmax.f32 %v1107_v14, 0.0  ;;  %1404 = vmatmul.mubr.bf16.gmra.mrb[120].mxu1 %v3963_v54  ;;  %2203 = vmatprep.subr.bf16.mxu0 %v3066_v58  ;;  %v3082_v58 = vld [vmem:[%s3856_s5 + $0x1b0] ss:$8 sps:$4 sm:$0xff]   ;;  %v3087_v14 = vld [vmem:[%s3856_s5 + $0x1c4] ss:$8 sps:$4 sm:$0xff]  }
 0x218   : > { %v1453_v61 = vmax.f32 %v1109_v53, 0.0  ;;  %1413 = vmatprep.mubr.bf16.mxu1 %v3965_v59 }
 0x219   : > { %v1628_v62 = vpack.c.bf16 %v1452_v40, %v1448_v38 }
 0x21a   : > { %v1629_v63 = vpack.c.bf16 %v1453_v61, %v1449_v57  ;;  %v1112_v0 = vpop.f32.mrb[16].mxu1  ;;  %2204 = vmatpush1.bf16.msra.mxu0 %v3064_v25 }
 0x21b   : > { %v1113_v3 = vadd.f32 %v1112_v0, %v4002_v2  ;;  %v1114_v5 = vpop.f32.mrb[17].mxu1  ;;  %2205 = vmatprep.subr.bf16.mxu0 %v3069_v55  ;;  %v3085_v55 = vld [vmem:[%s3856_s5 + $0x1c0] ss:$8 sps:$4 sm:$0xff]  }
 0x21c   : > { %v1115_v54 = vadd.f32 %v1114_v5, %v4005_v4  ;;  %v1116_v7 = vpop.f32.mrb[18].mxu1  ;;  %2062 = vmatprep.mubr.bf16.mxu0 %v1629_v63 }
 0x21d   : > { %v1117_v8 = vadd.f32 %v1116_v7, %v4002_v2  ;;  %v1118_v9 = vpop.f32.mrb[19].mxu1  ;;  %2063 = vmatmul.mubr.bf16.gmra.mrb[12].mxu0 %v1628_v62  ;;  %v1456_v11 = vmax.f32 %v1113_v3, 0.0  ;;  %v3090_v62 = vld [vmem:[%s3856_s5 + $0x1d4] ss:$8 sps:$4 sm:$0xff]  }
 0x21e   : > { %v1119_v59 = vadd.f32 %v1118_v9, %v4005_v4  ;;  %2206 = vmatpush1.bf16.msra.mxu0 %v3067_v1  ;;  %v1457_v16 = vmax.f32 %v1115_v54, 0.0 }
 0x21f   : > { %v1460_v13 = vmax.f32 %v1117_v8, 0.0  ;;  %1414 = vmatmul.mubr.bf16.gmra.mrb[124].mxu1 %v3969_v60  ;;  %2207 = vmatprep.subr.bf16.mxu0 %v3072_v6  ;;  %v3088_v6 = vld [vmem:[%s3856_s5 + $0x1d0] ss:$8 sps:$4 sm:$0xff]   ;;  %v3093_v8 = vld [vmem:[%s3856_s5 + $0x1e4] ss:$8 sps:$4 sm:$0xff]  }
 0x220   : > { %v1461_v17 = vmax.f32 %v1119_v59, 0.0 }
 0x221   : > { %v1632_v18 = vpack.c.bf16 %v1460_v13, %v1456_v11 }
 0x222   : > { %v1633_v19 = vpack.c.bf16 %v1461_v17, %v1457_v16  ;;  %v1122_v20 = vpop.f32.mrb[20].mxu1  ;;  %2208 = vmatpush1.bf16.msra.mxu0 %v3070_v10 }
 0x223   : > { %v1123_v22 = vadd.f32 %v1122_v20, %v4002_v2  ;;  %v1124_v23 = vpop.f32.mrb[21].mxu1  ;;  %2209 = vmatprep.subr.bf16.mxu0 %v3075_v15  ;;  %v3091_v15 = vld [vmem:[%s3856_s5 + $0x1e0] ss:$8 sps:$4 sm:$0xff]  }
 0x224   : > { %v1125_v27 = vadd.f32 %v1124_v23, %v4005_v4  ;;  %v1126_v28 = vpop.f32.mrb[22].mxu1  ;;  %2072 = vmatprep.mubr.bf16.mxu0 %v1633_v19 }
 0x225   : > { %v1127_v60 = vadd.f32 %v1126_v28, %v4002_v2  ;;  %v1128_v29 = vpop.f32.mrb[23].mxu1  ;;  %2073 = vmatmul.mubr.bf16.gmra.mrb[16].mxu0 %v1632_v18  ;;  %v1464_v32 = vmax.f32 %v1123_v22, 0.0  ;;  %v3096_v18 = vld [vmem:[%s3856_s5 + $0x1f4] ss:$8 sps:$4 sm:$0xff]  }
 0x226   : > { %v1129_v30 = vadd.f32 %v1128_v29, %v4005_v4  ;;  %2210 = vmatpush1.bf16.msra.mxu0 %v3073_v21  ;;  %v1465_v35 = vmax.f32 %v1125_v27, 0.0 }
 0x227   : > { %v1468_v33 = vmax.f32 %v1127_v60, 0.0  ;;  %2211 = vmatprep.subr.bf16.mxu0 %v3078_v26  ;;  %v3094_v26 = vld [vmem:[%s3856_s5 + $0x1f0] ss:$8 sps:$4 sm:$0xff]  }
 0x228   : > { %v1469_v36 = vmax.f32 %v1129_v30, 0.0 }
 0x229   : > { %v1636_v37 = vpack.c.bf16 %v1468_v33, %v1464_v32 }
 0x22a   : > { %v1637_v41 = vpack.c.bf16 %v1469_v36, %v1465_v35  ;;  %v1132_v42 = vpop.f32.mrb[24].mxu1  ;;  %2212 = vmatpush1.bf16.msra.mxu0 %v3076_v31 }
 0x22b   : > { %v1133_v44 = vadd.f32 %v1132_v42, %v4002_v2  ;;  %v1134_v45 = vpop.f32.mrb[25].mxu1  ;;  %2213 = vmatprep.subr.bf16.mxu0 %v3081_v34 }
 0x22c   : > { %v1135_v49 = vadd.f32 %v1134_v45, %v4005_v4  ;;  %v1136_v50 = vpop.f32.mrb[26].mxu1  ;;  %2082 = vmatprep.mubr.bf16.mxu0 %v1637_v41 }
 0x22d   : > { %v1137_v51 = vadd.f32 %v1136_v50, %v4002_v2  ;;  %v1138_v39 = vpop.f32.mrb[27].mxu1  ;;  %2083 = vmatmul.mubr.bf16.gmra.mrb[20].mxu0 %v1636_v37  ;;  %v1472_v52 = vmax.f32 %v1133_v44, 0.0 }
 0x22e   : > { %v1139_v48 = vadd.f32 %v1138_v39, %v4005_v4  ;;  %2214 = vmatpush1.bf16.msra.mxu0 %v3079_v43  ;;  %v1473_v24 = vmax.f32 %v1135_v49, 0.0 }
 0x22f   : > { %v1476_v12 = vmax.f32 %v1137_v51, 0.0  ;;  %2215 = vmatprep.subr.bf16.mxu0 %v3084_v47 }
 0x230   : > { %v1477_v53 = vmax.f32 %v1139_v48, 0.0 }
 0x231   : > { %v1640_v25 = vpack.c.bf16 %v1476_v12, %v1472_v52 }
 0x232   : > { %v1641_v38 = vpack.c.bf16 %v1477_v53, %v1473_v24  ;;  %v1142_v40 = vpop.f32.mrb[28].mxu1  ;;  %2216 = vmatpush1.bf16.msra.mxu0 %v3082_v58 }
 0x233   : > { %v1143_v57 = vadd.f32 %v1142_v40, %v4002_v2  ;;  %v1144_v61 = vpop.f32.mrb[29].mxu1  ;;  %2217 = vmatprep.subr.bf16.mxu0 %v3087_v14 }
 0x234   : > { %v1145_v63 = vadd.f32 %v1144_v61, %v4005_v4  ;;  %v1146_v0 = vpop.f32.mrb[30].mxu1  ;;  %2092 = vmatprep.mubr.bf16.mxu0 %v1641_v38 }
 0x235   : > { %v1147_v1 = vadd.f32 %v1146_v0, %v4002_v2  ;;  %v1148_v3 = vpop.f32.mrb[31].mxu1  ;;  %2093 = vmatmul.mubr.bf16.gmra.mrb[24].mxu0 %v1640_v25  ;;  %v1480_v54 = vmax.f32 %v1143_v57, 0.0 }
 0x236   : > { %v1149_v5 = vadd.f32 %v1148_v3, %v4005_v4  ;;  %2218 = vmatpush1.bf16.msra.mxu0 %v3085_v55  ;;  %v1481_v9 = vmax.f32 %v1145_v63, 0.0 }
 0x237   : > { %v1484_v7 = vmax.f32 %v1147_v1, 0.0  ;;  %2219 = vmatprep.subr.bf16.mxu0 %v3090_v62 }
 0x238   : > { %v1485_v59 = vmax.f32 %v1149_v5, 0.0 }
 0x239   : > { %v1644_v10 = vpack.c.bf16 %v1484_v7, %v1480_v54 }
 0x23a   : > { %v1645_v11 = vpack.c.bf16 %v1485_v59, %v1481_v9  ;;  %v1152_v13 = vpop.f32.mrb[32].mxu1  ;;  %2220 = vmatpush1.bf16.msra.mxu0 %v3088_v6 }
 0x23b   : > { %v1153_v16 = vadd.f32 %v1152_v13, %v4002_v2  ;;  %v1154_v17 = vpop.f32.mrb[33].mxu1  ;;  %2221 = vmatprep.subr.bf16.mxu0 %v3093_v8 }
 0x23c   : > { %v1155_v19 = vadd.f32 %v1154_v17, %v4005_v4  ;;  %v1156_v20 = vpop.f32.mrb[34].mxu1  ;;  %2102 = vmatprep.mubr.bf16.mxu0 %v1645_v11 }
 0x23d   : > { %v1157_v21 = vadd.f32 %v1156_v20, %v4002_v2  ;;  %v1158_v22 = vpop.f32.mrb[35].mxu1  ;;  %2103 = vmatmul.mubr.bf16.gmra.mrb[28].mxu0 %v1644_v10  ;;  %v1488_v27 = vmax.f32 %v1153_v16, 0.0 }
 0x23e   : > { %v1159_v23 = vadd.f32 %v1158_v22, %v4005_v4  ;;  %2222 = vmatpush1.bf16.msra.mxu0 %v3091_v15  ;;  %v1489_v60 = vmax.f32 %v1155_v19, 0.0 }
 0x23f   : > { %v1492_v28 = vmax.f32 %v1157_v21, 0.0  ;;  %2223 = vmatprep.subr.bf16.mxu0 %v3096_v18 }
 0x240   : > { %v1493_v29 = vmax.f32 %v1159_v23, 0.0 }
 0x241   : > { %v1648_v30 = vpack.c.bf16 %v1492_v28, %v1488_v27 }
 0x242   : > { %v1649_v31 = vpack.c.bf16 %v1493_v29, %v1489_v60  ;;  %v1162_v32 = vpop.f32.mrb[36].mxu1  ;;  %2224 = vmatpush1.bf16.msra.mxu0 %v3094_v26 }
 0x243   : > { %v1163_v33 = vadd.f32 %v1162_v32, %v4002_v2  ;;  %v1164_v34 = vpop.f32.mrb[37].mxu1 }
 0x244   : > { %v1165_v35 = vadd.f32 %v1164_v34, %v4005_v4  ;;  %v1166_v36 = vpop.f32.mrb[38].mxu1  ;;  %2112 = vmatprep.mubr.bf16.mxu0 %v1649_v31 }
 0x245   : > { %v1167_v37 = vadd.f32 %v1166_v36, %v4002_v2  ;;  %v1168_v41 = vpop.f32.mrb[39].mxu1  ;;  %2113 = vmatmul.mubr.bf16.gmra.mrb[32].mxu0 %v1648_v30  ;;  %v1496_v43 = vmax.f32 %v1163_v33, 0.0 }
 0x246   : > { %v1169_v42 = vadd.f32 %v1168_v41, %v4005_v4  ;;  %v1497_v45 = vmax.f32 %v1165_v35, 0.0 }
 0x247   : > { %v1500_v44 = vmax.f32 %v1167_v37, 0.0 }
 0x248   : > { %v1501_v47 = vmax.f32 %v1169_v42, 0.0 }
 0x249   : > { %v1652_v49 = vpack.c.bf16 %v1500_v44, %v1496_v43 }
 0x24a   : > { %v1653_v50 = vpack.c.bf16 %v1501_v47, %v1497_v45  ;;  %v1172_v51 = vpop.f32.mrb[40].mxu1 }
 0x24b   : > { %v1173_v39 = vadd.f32 %v1172_v51, %v4002_v2  ;;  %v1174_v48 = vpop.f32.mrb[41].mxu1 }
 0x24c   : > { %v1175_v58 = vadd.f32 %v1174_v48, %v4005_v4  ;;  %v1176_v52 = vpop.f32.mrb[42].mxu1  ;;  %2122 = vmatprep.mubr.bf16.mxu0 %v1653_v50 }
 0x24d   : > { %v1177_v12 = vadd.f32 %v1176_v52, %v4002_v2  ;;  %v1178_v14 = vpop.f32.mrb[43].mxu1  ;;  %2123 = vmatmul.mubr.bf16.gmra.mrb[36].mxu0 %v1652_v49  ;;  %v1504_v53 = vmax.f32 %v1173_v39, 0.0 }
 0x24e   : > { %v1179_v24 = vadd.f32 %v1178_v14, %v4005_v4  ;;  %v1505_v38 = vmax.f32 %v1175_v58, 0.0 }
 0x24f   : > { %v1508_v25 = vmax.f32 %v1177_v12, 0.0 }
 0x250   : > { %v1509_v40 = vmax.f32 %v1179_v24, 0.0 }
 0x251   : > { %v1656_v55 = vpack.c.bf16 %v1508_v25, %v1504_v53 }
 0x252   : > { %v1657_v57 = vpack.c.bf16 %v1509_v40, %v1505_v38  ;;  %v1182_v61 = vpop.f32.mrb[44].mxu1 }
 0x253   : > { %v1183_v62 = vadd.f32 %v1182_v61, %v4002_v2  ;;  %v1184_v63 = vpop.f32.mrb[45].mxu1 }
 0x254   : > { %v1185_v0 = vadd.f32 %v1184_v63, %v4005_v4  ;;  %v1186_v1 = vpop.f32.mrb[46].mxu1  ;;  %2132 = vmatprep.mubr.bf16.mxu0 %v1657_v57  ;;  %v708_v57 = vsub.s32 2, %v3992_v46  ;;  %v712_v63 = vsub.s32 3, %v3992_v46 }
 0x255   : > { %v1187_v3 = vadd.f32 %v1186_v1, %v4002_v2  ;;  %v1188_v5 = vpop.f32.mrb[47].mxu1  ;;  %2133 = vmatmul.mubr.bf16.gmra.mrb[40].mxu0 %v1656_v55  ;;  %v1512_v54 = vmax.f32 %v1183_v62, 0.0 }
 0x256   : > { %v1189_v6 = vadd.f32 %v1188_v5, %v4005_v4  ;;  %v1513_v8 = vmax.f32 %v1185_v0, 0.0 }
 0x257   : > { %v1516_v7 = vmax.f32 %v1187_v3, 0.0 }
 0x258   : > { %v1517_v9 = vmax.f32 %v1189_v6, 0.0 }
 0x259   : > { %v1660_v59 = vpack.c.bf16 %v1516_v7, %v1512_v54  ;;  %v4115_v54 = vrot.slane %v3997_v56, %v708_v57 }
 0x25a   : > { %v1661_v10 = vpack.c.bf16 %v1517_v9, %v1513_v8  ;;  %v1192_v11 = vpop.f32.mrb[48].mxu1  ;;  %v4118_v9 = vrot.slane %v3997_v56, %v712_v63 }
 0x25b   : > { %v1193_v13 = vadd.f32 %v1192_v11, %v4002_v2  ;;  %v1194_v15 = vpop.f32.mrb[49].mxu1 }
 0x25c   : > { %v1195_v16 = vadd.f32 %v1194_v15, %v4005_v4  ;;  %v1196_v17 = vpop.f32.mrb[50].mxu1  ;;  %2142 = vmatprep.mubr.bf16.mxu0 %v1661_v10 }
 0x25d   : > { %v1197_v18 = vadd.f32 %v1196_v17, %v4002_v2  ;;  %v1198_v19 = vpop.f32.mrb[51].mxu1  ;;  %2143 = vmatmul.mubr.bf16.gmra.mrb[44].mxu0 %v1660_v59  ;;  %v1520_v21 = vmax.f32 %v1193_v13, 0.0 }
 0x25e   : > { %v1199_v20 = vadd.f32 %v1198_v19, %v4005_v4  ;;  %v1521_v23 = vmax.f32 %v1195_v16, 0.0 }
 0x25f   : > { %v1524_v22 = vmax.f32 %v1197_v18, 0.0 }
 0x260   : > { %v1525_v26 = vmax.f32 %v1199_v20, 0.0 }
 0x261   : > { %v1664_v27 = vpack.c.bf16 %v1524_v22, %v1520_v21 }
 0x262   : > { %v1665_v28 = vpack.c.bf16 %v1525_v26, %v1521_v23  ;;  %v1202_v60 = vpop.f32.mrb[52].mxu1 }
 0x263   : > { %v1203_v29 = vadd.f32 %v1202_v60, %v4002_v2  ;;  %v1204_v30 = vpop.f32.mrb[53].mxu1 }
 0x264   : > { %v1205_v31 = vadd.f32 %v1204_v30, %v4005_v4  ;;  %v1206_v32 = vpop.f32.mrb[54].mxu1  ;;  %2152 = vmatprep.mubr.bf16.mxu0 %v1665_v28 }
 0x265   : > { %v1207_v33 = vadd.f32 %v1206_v32, %v4002_v2  ;;  %v1208_v34 = vpop.f32.mrb[55].mxu1  ;;  %2153 = vmatmul.mubr.bf16.gmra.mrb[48].mxu0 %v1664_v27  ;;  %v1528_v36 = vmax.f32 %v1203_v29, 0.0 }
 0x266   : > { %v1209_v35 = vadd.f32 %v1208_v34, %v4005_v4  ;;  %v1529_v41 = vmax.f32 %v1205_v31, 0.0 }
 0x267   : > { %v1532_v37 = vmax.f32 %v1207_v33, 0.0 }
 0x268   : > { %v1533_v42 = vmax.f32 %v1209_v35, 0.0 }
 0x269   : > { %v1668_v43 = vpack.c.bf16 %v1532_v37, %v1528_v36 }
 0x26a   : > { %v1669_v44 = vpack.c.bf16 %v1533_v42, %v1529_v41  ;;  %v1212_v45 = vpop.f32.mrb[56].mxu1 }
 0x26b   : > { %v1213_v47 = vadd.f32 %v1212_v45, %v4002_v2  ;;  %v1214_v49 = vpop.f32.mrb[57].mxu1 }
 0x26c   : > { %v1215_v50 = vadd.f32 %v1214_v49, %v4005_v4  ;;  %v1216_v51 = vpop.f32.mrb[58].mxu1  ;;  %2162 = vmatprep.mubr.bf16.mxu0 %v1669_v44 }
 0x26d   : > { %v1217_v39 = vadd.f32 %v1216_v51, %v4002_v2  ;;  %v1218_v48 = vpop.f32.mrb[59].mxu1  ;;  %2163 = vmatmul.mubr.bf16.gmra.mrb[52].mxu0 %v1668_v43  ;;  %v1536_v52 = vmax.f32 %v1213_v47, 0.0 }
 0x26e   : > { %v1219_v58 = vadd.f32 %v1218_v48, %v4005_v4  ;;  %v1537_v14 = vmax.f32 %v1215_v50, 0.0 }
 0x26f   : > { %v1540_v12 = vmax.f32 %v1217_v39, 0.0 }
 0x270   : > { %v1541_v24 = vmax.f32 %v1219_v58, 0.0 }
 0x271   : > { %v1672_v53 = vpack.c.bf16 %v1540_v12, %v1536_v52 }
 0x272   : > { %v1673_v25 = vpack.c.bf16 %v1541_v24, %v1537_v14  ;;  %v1222_v38 = vpop.f32.mrb[60].mxu1 }
 0x273   : > { %v1223_v40 = vadd.f32 %v1222_v38, %v4002_v2  ;;  %v1224_v55 = vpop.f32.mrb[61].mxu1 }
 0x274   : > { %v1225_v61 = vadd.f32 %v1224_v55, %v4005_v4  ;;  %v1226_v62 = vpop.f32.mrb[62].mxu1  ;;  %2172 = vmatprep.mubr.bf16.mxu0 %v1673_v25 }
 0x275   : > { %v1227_v0 = vadd.f32 %v1226_v62, %v4002_v2  ;;  %v1228_v1 = vpop.f32.mrb[63].mxu1  ;;  %2173 = vmatmul.mubr.bf16.gmra.mrb[56].mxu0 %v1672_v53  ;;  %v1544_v5 = vmax.f32 %v1223_v40, 0.0 }
 0x276   : > { %v1229_v3 = vadd.f32 %v1228_v1, %v4005_v4  ;;  %v1545_v7 = vmax.f32 %v1225_v61, 0.0 }
 0x277   : > { %v1548_v6 = vmax.f32 %v1227_v0, 0.0 }
 0x278   : > { %v1549_v8 = vmax.f32 %v1229_v3, 0.0 }
 0x279   : > { %v1676_v59 = vpack.c.bf16 %v1548_v6, %v1544_v5 }
 0x27a   : > { %v1677_v10 = vpack.c.bf16 %v1549_v8, %v1545_v7  ;;  %v1265_v11 = vpop.f32.mrb[64].mxu1 }
 0x27b   : > { %v1266_v46 = vadd.f32 %v1265_v11, %v4115_v54  ;;  %v1267_v2 = vpop.f32.mrb[65].mxu1 }
 0x27c   : > { %v1268_v13 = vadd.f32 %v1267_v2, %v4118_v9  ;;  %v1269_v15 = vpop.f32.mrb[66].mxu1  ;;  %2182 = vmatprep.mubr.bf16.mxu0 %v1677_v10 }
 0x27d   : > { %v1270_v4 = vadd.f32 %v1269_v15, %v4115_v54  ;;  %v1271_v16 = vpop.f32.mrb[67].mxu1  ;;  %2183 = vmatmul.mubr.bf16.gmra.mrb[60].mxu0 %v1676_v59  ;;  %v1426_v18 = vmax.f32 %v1266_v46, 0.0 }
 0x27e   : > { %v1272_v17 = vadd.f32 %v1271_v16, %v4118_v9  ;;  %v1427_v56 = vmax.f32 %v1268_v13, 0.0 }
 0x27f   : > { %v1430_v19 = vmax.f32 %v1270_v4, 0.0 }
 0x280   : > { %v1431_v20 = vmax.f32 %v1272_v17, 0.0 }
 0x281   : > { %v1618_v21 = vpack.c.bf16 %v1430_v19, %v1426_v18 }
 0x282   : > { %v1619_v22 = vpack.c.bf16 %v1431_v20, %v1427_v56  ;;  %v1275_v23 = vpop.f32.mrb[68].mxu1 }
 0x283   : > { %v1276_v26 = vadd.f32 %v1275_v23, %v4115_v54  ;;  %v1277_v27 = vpop.f32.mrb[69].mxu1 }
 0x284   : > { %v1278_v28 = vadd.f32 %v1277_v27, %v4118_v9  ;;  %v1279_v60 = vpop.f32.mrb[70].mxu1  ;;  %2225 = vmatprep.mubr.bf16.mxu0 %v1619_v22 }
 0x285   : > { %v1280_v29 = vadd.f32 %v1279_v60, %v4115_v54  ;;  %v1281_v30 = vpop.f32.mrb[71].mxu1  ;;  %2226 = vmatmul.mubr.bf16.vlgmr.msra.gmra.mrb[0].mxu0 %v1618_v21  ;;  %v1434_v32 = vmax.f32 %v1276_v26, 0.0 }
 0x286   : > { %v1282_v31 = vadd.f32 %v1281_v30, %v4118_v9  ;;  %v1435_v34 = vmax.f32 %v1278_v28, 0.0 }
 0x287   : > { %v1438_v33 = vmax.f32 %v1280_v29, 0.0 }
 0x288   : > { %v1439_v35 = vmax.f32 %v1282_v31, 0.0 }
 0x289   : > { %v1622_v36 = vpack.c.bf16 %v1438_v33, %v1434_v32 }
 0x28a   : > { %v1623_v37 = vpack.c.bf16 %v1439_v35, %v1435_v34  ;;  %v1285_v41 = vpop.f32.mrb[72].mxu1 }
 0x28b   : > { %v1286_v42 = vadd.f32 %v1285_v41, %v4115_v54  ;;  %v1287_v43 = vpop.f32.mrb[73].mxu1 }
 0x28c   : > { %v1288_v44 = vadd.f32 %v1287_v43, %v4118_v9  ;;  %v1289_v45 = vpop.f32.mrb[74].mxu1  ;;  %2235 = vmatprep.mubr.bf16.mxu0 %v1623_v37 }
 0x28d   : > { %v1290_v47 = vadd.f32 %v1289_v45, %v4115_v54  ;;  %v1291_v49 = vpop.f32.mrb[75].mxu1  ;;  %2236 = vmatmul.mubr.bf16.gmra.mrb[4].mxu0 %v1622_v36  ;;  %v1442_v51 = vmax.f32 %v1286_v42, 0.0 }
 0x28e   : > { %v1292_v50 = vadd.f32 %v1291_v49, %v4118_v9  ;;  %v1443_v48 = vmax.f32 %v1288_v44, 0.0 }
 0x28f   : > { %v1446_v39 = vmax.f32 %v1290_v47, 0.0 }
 0x290   : > { %v1447_v58 = vmax.f32 %v1292_v50, 0.0 }
 0x291   : > { %v1626_v52 = vpack.c.bf16 %v1446_v39, %v1442_v51 }
 0x292   : > { %v1627_v12 = vpack.c.bf16 %v1447_v58, %v1443_v48  ;;  %v1295_v14 = vpop.f32.mrb[76].mxu1 }
 0x293   : > { %v1296_v24 = vadd.f32 %v1295_v14, %v4115_v54  ;;  %v1297_v53 = vpop.f32.mrb[77].mxu1 }
 0x294   : > { %v1298_v25 = vadd.f32 %v1297_v53, %v4118_v9  ;;  %v1299_v38 = vpop.f32.mrb[78].mxu1  ;;  %2245 = vmatprep.mubr.bf16.mxu0 %v1627_v12 }
 0x295   : > { %v1300_v40 = vadd.f32 %v1299_v38, %v4115_v54  ;;  %v1301_v55 = vpop.f32.mrb[79].mxu1  ;;  %2246 = vmatmul.mubr.bf16.gmra.mrb[8].mxu0 %v1626_v52  ;;  %v1450_v61 = vmax.f32 %v1296_v24, 0.0 }
 0x296   : > { %v1302_v57 = vadd.f32 %v1301_v55, %v4118_v9  ;;  %v1451_v63 = vmax.f32 %v1298_v25, 0.0 }
 0x297   : > { %v1454_v62 = vmax.f32 %v1300_v40, 0.0 }
 0x298   : > { %v1455_v0 = vmax.f32 %v1302_v57, 0.0 }
 0x299   : > { %v1630_v1 = vpack.c.bf16 %v1454_v62, %v1450_v61 }
 0x29a   : > { %v1631_v3 = vpack.c.bf16 %v1455_v0, %v1451_v63  ;;  %v1305_v5 = vpop.f32.mrb[80].mxu1 }
 0x29b   : > { %v1306_v6 = vadd.f32 %v1305_v5, %v4115_v54  ;;  %v1307_v7 = vpop.f32.mrb[81].mxu1 }
 0x29c   : > { %v1308_v8 = vadd.f32 %v1307_v7, %v4118_v9  ;;  %v1309_v59 = vpop.f32.mrb[82].mxu1  ;;  %2255 = vmatprep.mubr.bf16.mxu0 %v1631_v3 }
 0x29d   : > { %v1310_v10 = vadd.f32 %v1309_v59, %v4115_v54  ;;  %v1311_v11 = vpop.f32.mrb[83].mxu1  ;;  %2256 = vmatmul.mubr.bf16.gmra.mrb[12].mxu0 %v1630_v1  ;;  %v1458_v2 = vmax.f32 %v1306_v6, 0.0 }
 0x29e   : > { %v1312_v46 = vadd.f32 %v1311_v11, %v4118_v9  ;;  %v1459_v15 = vmax.f32 %v1308_v8, 0.0 }
 0x29f   : > { %v1462_v13 = vmax.f32 %v1310_v10, 0.0 }
 0x2a0   : > { %v1463_v4 = vmax.f32 %v1312_v46, 0.0 }
 0x2a1   : > { %v1634_v16 = vpack.c.bf16 %v1462_v13, %v1458_v2 }
 0x2a2   : > { %v1635_v17 = vpack.c.bf16 %v1463_v4, %v1459_v15  ;;  %v1315_v18 = vpop.f32.mrb[84].mxu1 }
 0x2a3   : > { %v1316_v19 = vadd.f32 %v1315_v18, %v4115_v54  ;;  %v1317_v56 = vpop.f32.mrb[85].mxu1 }
 0x2a4   : > { %v1318_v20 = vadd.f32 %v1317_v56, %v4118_v9  ;;  %v1319_v21 = vpop.f32.mrb[86].mxu1  ;;  %2265 = vmatprep.mubr.bf16.mxu0 %v1635_v17 }
 0x2a5   : > { %v1320_v22 = vadd.f32 %v1319_v21, %v4115_v54  ;;  %v1321_v23 = vpop.f32.mrb[87].mxu1  ;;  %2266 = vmatmul.mubr.bf16.gmra.mrb[16].mxu0 %v1634_v16  ;;  %v1466_v27 = vmax.f32 %v1316_v19, 0.0 }
 0x2a6   : > { %v1322_v26 = vadd.f32 %v1321_v23, %v4118_v9  ;;  %v1467_v60 = vmax.f32 %v1318_v20, 0.0 }
 0x2a7   : > { %v1470_v28 = vmax.f32 %v1320_v22, 0.0 }
 0x2a8   : > { %v1471_v29 = vmax.f32 %v1322_v26, 0.0 }
 0x2a9   : > { %v1638_v30 = vpack.c.bf16 %v1470_v28, %v1466_v27 }
 0x2aa   : > { %v1639_v31 = vpack.c.bf16 %v1471_v29, %v1467_v60  ;;  %v1325_v32 = vpop.f32.mrb[88].mxu1 }
 0x2ab   : > { %v1326_v33 = vadd.f32 %v1325_v32, %v4115_v54  ;;  %v1327_v34 = vpop.f32.mrb[89].mxu1 }
 0x2ac   : > { %v1328_v35 = vadd.f32 %v1327_v34, %v4118_v9  ;;  %v1329_v36 = vpop.f32.mrb[90].mxu1  ;;  %2275 = vmatprep.mubr.bf16.mxu0 %v1639_v31 }
 0x2ad   : > { %v1330_v37 = vadd.f32 %v1329_v36, %v4115_v54  ;;  %v1331_v41 = vpop.f32.mrb[91].mxu1  ;;  %2276 = vmatmul.mubr.bf16.gmra.mrb[20].mxu0 %v1638_v30  ;;  %v1474_v43 = vmax.f32 %v1326_v33, 0.0 }
 0x2ae   : > { %v1332_v42 = vadd.f32 %v1331_v41, %v4118_v9  ;;  %v1475_v45 = vmax.f32 %v1328_v35, 0.0 }
 0x2af   : > { %v1478_v44 = vmax.f32 %v1330_v37, 0.0 }
 0x2b0   : > { %v1479_v47 = vmax.f32 %v1332_v42, 0.0 }
 0x2b1   : > { %v1642_v49 = vpack.c.bf16 %v1478_v44, %v1474_v43 }
 0x2b2   : > { %v1643_v50 = vpack.c.bf16 %v1479_v47, %v1475_v45  ;;  %v1335_v51 = vpop.f32.mrb[92].mxu1 }
 0x2b3   : > { %v1336_v39 = vadd.f32 %v1335_v51, %v4115_v54  ;;  %v1337_v48 = vpop.f32.mrb[93].mxu1 }
 0x2b4   : > { %v1338_v58 = vadd.f32 %v1337_v48, %v4118_v9  ;;  %v1339_v52 = vpop.f32.mrb[94].mxu1  ;;  %2285 = vmatprep.mubr.bf16.mxu0 %v1643_v50 }
 0x2b5   : > { %v1340_v12 = vadd.f32 %v1339_v52, %v4115_v54  ;;  %v1341_v14 = vpop.f32.mrb[95].mxu1  ;;  %2286 = vmatmul.mubr.bf16.gmra.mrb[24].mxu0 %v1642_v49  ;;  %v1482_v53 = vmax.f32 %v1336_v39, 0.0 }
 0x2b6   : > { %v1342_v24 = vadd.f32 %v1341_v14, %v4118_v9  ;;  %v1483_v38 = vmax.f32 %v1338_v58, 0.0 }
 0x2b7   : > { %v1486_v25 = vmax.f32 %v1340_v12, 0.0 }
 0x2b8   : > { %v1487_v40 = vmax.f32 %v1342_v24, 0.0 }
 0x2b9   : > { %v1646_v55 = vpack.c.bf16 %v1486_v25, %v1482_v53 }
 0x2ba   : > { %v1647_v57 = vpack.c.bf16 %v1487_v40, %v1483_v38  ;;  %v1345_v61 = vpop.f32.mrb[96].mxu1 }
 0x2bb   : > { %v1346_v62 = vadd.f32 %v1345_v61, %v4115_v54  ;;  %v1347_v63 = vpop.f32.mrb[97].mxu1 }
 0x2bc   : > { %v1348_v0 = vadd.f32 %v1347_v63, %v4118_v9  ;;  %v1349_v1 = vpop.f32.mrb[98].mxu1  ;;  %2295 = vmatprep.mubr.bf16.mxu0 %v1647_v57 }
 0x2bd   : > { %v1350_v3 = vadd.f32 %v1349_v1, %v4115_v54  ;;  %v1351_v5 = vpop.f32.mrb[99].mxu1  ;;  %2296 = vmatmul.mubr.bf16.gmra.mrb[28].mxu0 %v1646_v55  ;;  %v1490_v7 = vmax.f32 %v1346_v62, 0.0 }
 0x2be   : > { %v1352_v6 = vadd.f32 %v1351_v5, %v4118_v9  ;;  %v1491_v59 = vmax.f32 %v1348_v0, 0.0 }
 0x2bf   : > { %v1494_v8 = vmax.f32 %v1350_v3, 0.0 }
 0x2c0   : > { %v1495_v10 = vmax.f32 %v1352_v6, 0.0 }
 0x2c1   : > { %v1650_v11 = vpack.c.bf16 %v1494_v8, %v1490_v7 }
 0x2c2   : > { %v1651_v46 = vpack.c.bf16 %v1495_v10, %v1491_v59  ;;  %v1355_v2 = vpop.f32.mrb[100].mxu1 }
 0x2c3   : > { %v1356_v13 = vadd.f32 %v1355_v2, %v4115_v54  ;;  %v1357_v15 = vpop.f32.mrb[101].mxu1 }
 0x2c4   : > { %v1358_v4 = vadd.f32 %v1357_v15, %v4118_v9  ;;  %v1359_v16 = vpop.f32.mrb[102].mxu1  ;;  %2305 = vmatprep.mubr.bf16.mxu0 %v1651_v46 }
 0x2c5   : > { %v1360_v17 = vadd.f32 %v1359_v16, %v4115_v54  ;;  %v1361_v18 = vpop.f32.mrb[103].mxu1  ;;  %2306 = vmatmul.mubr.bf16.gmra.mrb[32].mxu0 %v1650_v11  ;;  %v1498_v56 = vmax.f32 %v1356_v13, 0.0 }
 0x2c6   : > { %v1362_v19 = vadd.f32 %v1361_v18, %v4118_v9  ;;  %v1499_v21 = vmax.f32 %v1358_v4, 0.0 }
 0x2c7   : > { %v1502_v20 = vmax.f32 %v1360_v17, 0.0 }
 0x2c8   : > { %v1503_v22 = vmax.f32 %v1362_v19, 0.0 }
 0x2c9   : > { %v1654_v23 = vpack.c.bf16 %v1502_v20, %v1498_v56 }
 0x2ca   : > { %v1655_v26 = vpack.c.bf16 %v1503_v22, %v1499_v21  ;;  %v1365_v27 = vpop.f32.mrb[104].mxu1 }
 0x2cb   : > { %v1366_v28 = vadd.f32 %v1365_v27, %v4115_v54  ;;  %v1367_v60 = vpop.f32.mrb[105].mxu1 }
 0x2cc   : > { %v1368_v29 = vadd.f32 %v1367_v60, %v4118_v9  ;;  %v1369_v30 = vpop.f32.mrb[106].mxu1  ;;  %2315 = vmatprep.mubr.bf16.mxu0 %v1655_v26 }
 0x2cd   : > { %v1370_v31 = vadd.f32 %v1369_v30, %v4115_v54  ;;  %v1371_v32 = vpop.f32.mrb[107].mxu1  ;;  %2316 = vmatmul.mubr.bf16.gmra.mrb[36].mxu0 %v1654_v23  ;;  %v1506_v34 = vmax.f32 %v1366_v28, 0.0 }
 0x2ce   : > { %v1372_v33 = vadd.f32 %v1371_v32, %v4118_v9  ;;  %v1507_v36 = vmax.f32 %v1368_v29, 0.0 }
 0x2cf   : > { %v1510_v35 = vmax.f32 %v1370_v31, 0.0 }
 0x2d0   : > { %v1511_v37 = vmax.f32 %v1372_v33, 0.0 }
 0x2d1   : > { %v1658_v41 = vpack.c.bf16 %v1510_v35, %v1506_v34 }
 0x2d2   : > { %v1659_v42 = vpack.c.bf16 %v1511_v37, %v1507_v36  ;;  %v1375_v43 = vpop.f32.mrb[108].mxu1 }
 0x2d3   : > { %v1376_v44 = vadd.f32 %v1375_v43, %v4115_v54  ;;  %v1377_v45 = vpop.f32.mrb[109].mxu1 }
 0x2d4   : > { %v1378_v47 = vadd.f32 %v1377_v45, %v4118_v9  ;;  %v1379_v49 = vpop.f32.mrb[110].mxu1  ;;  %2325 = vmatprep.mubr.bf16.mxu0 %v1659_v42 }
 0x2d5   : > { %v1380_v50 = vadd.f32 %v1379_v49, %v4115_v54  ;;  %v1381_v51 = vpop.f32.mrb[111].mxu1  ;;  %2326 = vmatmul.mubr.bf16.gmra.mrb[40].mxu0 %v1658_v41  ;;  %v1514_v48 = vmax.f32 %v1376_v44, 0.0 }
 0x2d6   : > { %v1382_v39 = vadd.f32 %v1381_v51, %v4118_v9  ;;  %v1515_v52 = vmax.f32 %v1378_v47, 0.0 }
 0x2d7   : > { %v1518_v58 = vmax.f32 %v1380_v50, 0.0 }
 0x2d8   : > { %v1519_v12 = vmax.f32 %v1382_v39, 0.0 }
 0x2d9   : > { %v1662_v14 = vpack.c.bf16 %v1518_v58, %v1514_v48  ;;  %v1552_v48 = vld [vmem:[%s3599_s13] sm:$0xff] }
 0x2da   : > { %v1663_v24 = vpack.c.bf16 %v1519_v12, %v1515_v52  ;;  %v1385_v53 = vpop.f32.mrb[112].mxu1  ;;  %v1554_v52 = vld [vmem:[%s3599_s13 + $0x10] sm:$0xff] }
 0x2db   : > { %v1386_v25 = vadd.f32 %v1385_v53, %v4115_v54  ;;  %v1387_v38 = vpop.f32.mrb[113].mxu1 }
 0x2dc   : > { %v1388_v40 = vadd.f32 %v1387_v38, %v4118_v9  ;;  %v1389_v55 = vpop.f32.mrb[114].mxu1  ;;  %2335 = vmatprep.mubr.bf16.mxu0 %v1663_v24 }
 0x2dd   : > { %v1390_v57 = vadd.f32 %v1389_v55, %v4115_v54  ;;  %v1391_v61 = vpop.f32.mrb[115].mxu1  ;;  %2336 = vmatmul.mubr.bf16.gmra.mrb[44].mxu0 %v1662_v14  ;;  %v1522_v63 = vmax.f32 %v1386_v25, 0.0  ;;  %v1555_v14 = vld [vmem:[%s3599_s13 + $0x18] sm:$0xff]  ;;  %v1556_v55 = vld [vmem:[%s3599_s13 + $0x20] sm:$0xff] }
 0x2de   : > { %v1392_v62 = vadd.f32 %v1391_v61, %v4118_v9  ;;  %v1523_v1 = vmax.f32 %v1388_v40, 0.0 }
 0x2df   : > { %v1526_v0 = vmax.f32 %v1390_v57, 0.0  ;;  %v1557_v57 = vld [vmem:[%s3599_s13 + $0x28] sm:$0xff] }
 0x2e0   : > { %v1527_v3 = vmax.f32 %v1392_v62, 0.0  ;;  %v1558_v62 = vld [vmem:[%s3599_s13 + $0x30] sm:$0xff] }
 0x2e1   : > { %v1666_v5 = vpack.c.bf16 %v1526_v0, %v1522_v63 }
 0x2e2   : > { %v1667_v6 = vpack.c.bf16 %v1527_v3, %v1523_v1  ;;  %v1395_v7 = vpop.f32.mrb[116].mxu1  ;;  %v1559_v1 = vld [vmem:[%s3599_s13 + $0x38] sm:$0xff] }
 0x2e3   : > { %v1396_v8 = vadd.f32 %v1395_v7, %v4115_v54  ;;  %v1397_v59 = vpop.f32.mrb[117].mxu1 }
 0x2e4   : > { %v1398_v10 = vadd.f32 %v1397_v59, %v4118_v9  ;;  %v1399_v11 = vpop.f32.mrb[118].mxu1  ;;  %2345 = vmatprep.mubr.bf16.mxu0 %v1667_v6  ;;  %v1560_v59 = vld [vmem:[%s3599_s13 + $0x40] sm:$0xff] }
 0x2e5   : > { %v1400_v46 = vadd.f32 %v1399_v11, %v4115_v54  ;;  %v1401_v2 = vpop.f32.mrb[119].mxu1  ;;  %2346 = vmatmul.mubr.bf16.gmra.mrb[48].mxu0 %v1666_v5  ;;  %v1530_v15 = vmax.f32 %v1396_v8, 0.0 }
 0x2e6   : > { %v1402_v13 = vadd.f32 %v1401_v2, %v4118_v9  ;;  %v1531_v16 = vmax.f32 %v1398_v10, 0.0  ;;  %v1561_v10 = vld [vmem:[%s3599_s13 + $0x48] sm:$0xff] }
 0x2e7   : > { %v1534_v4 = vmax.f32 %v1400_v46, 0.0  ;;  %v1562_v46 = vld [vmem:[%s3599_s13 + $0x50] sm:$0xff] }
 0x2e8   : > { %v1535_v17 = vmax.f32 %v1402_v13, 0.0 }
 0x2e9   : > { %v1670_v18 = vpack.c.bf16 %v1534_v4, %v1530_v15  ;;  %v1563_v15 = vld [vmem:[%s3599_s13 + $0x58] sm:$0xff] }
 0x2ea   : > { %v1671_v19 = vpack.c.bf16 %v1535_v17, %v1531_v16  ;;  %v1405_v56 = vpop.f32.mrb[120].mxu1 }
 0x2eb   : > { %v1406_v20 = vadd.f32 %v1405_v56, %v4115_v54  ;;  %v1407_v21 = vpop.f32.mrb[121].mxu1  ;;  %v1564_v56 = vld [vmem:[%s3599_s13 + $0x60] sm:$0xff] }
 0x2ec   : > { %v1408_v22 = vadd.f32 %v1407_v21, %v4118_v9  ;;  %v1409_v23 = vpop.f32.mrb[122].mxu1  ;;  %2355 = vmatprep.mubr.bf16.mxu0 %v1671_v19 }
 0x2ed   : > { %v1410_v26 = vadd.f32 %v1409_v23, %v4115_v54  ;;  %v1411_v27 = vpop.f32.mrb[123].mxu1  ;;  %2356 = vmatmul.mubr.bf16.gmra.mrb[52].mxu0 %v1670_v18  ;;  %v1538_v60 = vmax.f32 %v1406_v20, 0.0  ;;  %v1565_v20 = vld [vmem:[%s3599_s13 + $0x68] sm:$0xff] }
 0x2ee   : > { %v1412_v28 = vadd.f32 %v1411_v27, %v4118_v9  ;;  %v1539_v30 = vmax.f32 %v1408_v22, 0.0  ;;  %v1566_v22 = vld [vmem:[%s3599_s13 + $0x70] sm:$0xff]  ;;  %v1567_v27 = vld [vmem:[%s3599_s13 + $0x78] sm:$0xff] }
 0x2ef   : > { %v1542_v29 = vmax.f32 %v1410_v26, 0.0 }
 0x2f0   : > { %v1543_v31 = vmax.f32 %v1412_v28, 0.0 }
 0x2f1   : > { %v1674_v32 = vpack.c.bf16 %v1542_v29, %v1538_v60 }
 0x2f2   : > { %v1675_v33 = vpack.c.bf16 %v1543_v31, %v1539_v30  ;;  %v1415_v34 = vpop.f32.mrb[124].mxu1 }
 0x2f3   : > { %v1416_v35 = vadd.f32 %v1415_v34, %v4115_v54  ;;  %v1417_v36 = vpop.f32.mrb[125].mxu1 }
 0x2f4   : > { %v1418_v37 = vadd.f32 %v1417_v36, %v4118_v9  ;;  %v1419_v41 = vpop.f32.mrb[126].mxu1  ;;  %2365 = vmatprep.mubr.bf16.mxu0 %v1675_v33  ;;  %v1569_v33 = vld [vmem:[%s3599_s13 + $0x88] sm:$0xff] }
 0x2f5   : > { %v1420_v42 = vadd.f32 %v1419_v41, %v4115_v54  ;;  %v1421_v43 = vpop.f32.mrb[127].mxu1  ;;  %2366 = vmatmul.mubr.bf16.gmra.mrb[56].mxu0 %v1674_v32  ;;  %v1546_v45 = vmax.f32 %v1416_v35, 0.0  ;;  %v1553_v54 = vld [vmem:[%s3599_s13 + $0x8] sm:$0xff]  ;;  %v1568_v32 = vld [vmem:[%s3599_s13 + $0x80] sm:$0xff]  ;;  %v1570_v35 = vld [vmem:[%s3599_s13 + $0x90] sm:$0xff] }
 0x2f6   : > { %v1422_v44 = vadd.f32 %v1421_v43, %v4118_v9  ;;  %v1547_v49 = vmax.f32 %v1418_v37, 0.0  ;;  %v1571_v41 = vld [vmem:[%s3599_s13 + $0x98] sm:$0xff] }
 0x2f7   : > { %v1550_v47 = vmax.f32 %v1420_v42, 0.0 }
 0x2f8   : > { %v1551_v50 = vmax.f32 %v1422_v44, 0.0 }
 0x2f9   : > { %v1678_v51 = vpack.c.bf16 %v1550_v47, %v1546_v45 }
 0x2fa   : > { %v1679_v39 = vpack.c.bf16 %v1551_v50, %v1547_v49  ;;  %v1572_v49 = vld [vmem:[%s3599_s13 + $0xa0] sm:$0xff]  ;;  %v1573_v50 = vld [vmem:[%s3599_s13 + $0xa8] sm:$0xff] }
 0x2fc   : > { %2375 = vmatprep.mubr.bf16.mxu0 %v1679_v39  ;;  %v1574_v39 = vld [vmem:[%s3599_s13 + $0xb0] sm:$0xff] }
 0x2fd   : > { %2376 = vmatmul.mubr.bf16.gmra.mrb[60].mxu0 %v1678_v51 }
 0x358   : > { %v2227_v58 = vpop.f32.mrb[0].mxu0 }
 0x359   : > { %v2386_v9 = vadd.f32 %v2227_v58, %v1552_v48  ;;  %v2229_v12 = vpop.f32.mrb[1].mxu0  ;;  %v1575_v58 = vld [vmem:[%s3599_s13 + $0xb8] sm:$0xff] }
 0x35a   : > { %v2387_v24 = vadd.f32 %v2229_v12, %v1553_v54  ;;  %v2231_v53 = vpop.f32.mrb[2].mxu0 }
 0x35b   : > { %2450 = vst [vmem:[%s3599_s13] sm:$0xff] %v2386_v9  ;;  %v2388_v25 = vadd.f32 %v2231_v53, %v1554_v52  ;;  %v2233_v38 = vpop.f32.mrb[3].mxu0  ;;  %v1576_v53 = vld [vmem:[%s3599_s13 + $0xc0] sm:$0xff] }
 0x35c   : > { %2451 = vst [vmem:[%s3599_s13 + $0x8] sm:$0xff] %v2387_v24  ;;  %v2389_v40 = vadd.f32 %v2233_v38, %v1555_v14 }
 0x35d   : > { %2452 = vst [vmem:[%s3599_s13 + $0x10] sm:$0xff] %v2388_v25  ;;  %v1577_v25 = vld [vmem:[%s3599_s13 + $0xc8] sm:$0xff] }
 0x35e   : > { %2453 = vst [vmem:[%s3599_s13 + $0x18] sm:$0xff] %v2389_v40  ;;  %v1578_v40 = vld [vmem:[%s3599_s13 + $0xd0] sm:$0xff] }
 0x360   : > { %v2237_v61 = vpop.f32.mrb[4].mxu0 }
 0x361   : > { %v2390_v63 = vadd.f32 %v2237_v61, %v1556_v55  ;;  %v2239_v0 = vpop.f32.mrb[5].mxu0  ;;  %v1579_v61 = vld [vmem:[%s3599_s13 + $0xd8] sm:$0xff] }
 0x362   : > { %v2391_v3 = vadd.f32 %v2239_v0, %v1557_v57  ;;  %v2241_v5 = vpop.f32.mrb[6].mxu0 }
 0x363   : > { %2454 = vst [vmem:[%s3599_s13 + $0x20] sm:$0xff] %v2390_v63  ;;  %v2392_v6 = vadd.f32 %v2241_v5, %v1558_v62  ;;  %v2243_v7 = vpop.f32.mrb[7].mxu0  ;;  %v1580_v5 = vld [vmem:[%s3599_s13 + $0xe0] sm:$0xff] }
 0x364   : > { %2455 = vst [vmem:[%s3599_s13 + $0x28] sm:$0xff] %v2391_v3  ;;  %v2393_v8 = vadd.f32 %v2243_v7, %v1559_v1 }
 0x365   : > { %2456 = vst [vmem:[%s3599_s13 + $0x30] sm:$0xff] %v2392_v6  ;;  %v1581_v6 = vld [vmem:[%s3599_s13 + $0xe8] sm:$0xff] }
 0x366   : > { %2457 = vst [vmem:[%s3599_s13 + $0x38] sm:$0xff] %v2393_v8  ;;  %v1582_v8 = vld [vmem:[%s3599_s13 + $0xf0] sm:$0xff] }
 0x368   : > { %v2247_v11 = vpop.f32.mrb[8].mxu0 }
 0x369   : > { %v2394_v2 = vadd.f32 %v2247_v11, %v1560_v59  ;;  %v2249_v13 = vpop.f32.mrb[9].mxu0  ;;  %v1583_v11 = vld [vmem:[%s3599_s13 + $0xf8] sm:$0xff] }
 0x36a   : > { %v2395_v4 = vadd.f32 %v2249_v13, %v1561_v10  ;;  %v2251_v16 = vpop.f32.mrb[10].mxu0 }
 0x36b   : > { %2458 = vst [vmem:[%s3599_s13 + $0x40] sm:$0xff] %v2394_v2  ;;  %v2396_v17 = vadd.f32 %v2251_v16, %v1562_v46  ;;  %v2253_v18 = vpop.f32.mrb[11].mxu0  ;;  %v1584_v16 = vld [vmem:[%s3599_s13 + $0x100] sm:$0xff] }
 0x36c   : > { %2459 = vst [vmem:[%s3599_s13 + $0x48] sm:$0xff] %v2395_v4  ;;  %v2397_v19 = vadd.f32 %v2253_v18, %v1563_v15 }
 0x36d   : > { %2460 = vst [vmem:[%s3599_s13 + $0x50] sm:$0xff] %v2396_v17  ;;  %v1585_v17 = vld [vmem:[%s3599_s13 + $0x108] sm:$0xff] }
 0x36e   : > { %2461 = vst [vmem:[%s3599_s13 + $0x58] sm:$0xff] %v2397_v19  ;;  %v1586_v19 = vld [vmem:[%s3599_s13 + $0x110] sm:$0xff] }
 0x370   : > { %v2257_v21 = vpop.f32.mrb[12].mxu0 }
 0x371   : > { %v2398_v23 = vadd.f32 %v2257_v21, %v1564_v56  ;;  %v2259_v26 = vpop.f32.mrb[13].mxu0  ;;  %v1587_v21 = vld [vmem:[%s3599_s13 + $0x118] sm:$0xff] }
 0x372   : > { %v2399_v28 = vadd.f32 %v2259_v26, %v1565_v20  ;;  %v2261_v60 = vpop.f32.mrb[14].mxu0 }
 0x373   : > { %2462 = vst [vmem:[%s3599_s13 + $0x60] sm:$0xff] %v2398_v23  ;;  %v2400_v29 = vadd.f32 %v2261_v60, %v1566_v22  ;;  %v2263_v30 = vpop.f32.mrb[15].mxu0  ;;  %v1588_v60 = vld [vmem:[%s3599_s13 + $0x120] sm:$0xff] }
 0x374   : > { %2463 = vst [vmem:[%s3599_s13 + $0x68] sm:$0xff] %v2399_v28  ;;  %v2401_v31 = vadd.f32 %v2263_v30, %v1567_v27 }
 0x375   : > { %2464 = vst [vmem:[%s3599_s13 + $0x70] sm:$0xff] %v2400_v29  ;;  %v1589_v29 = vld [vmem:[%s3599_s13 + $0x128] sm:$0xff] }
 0x376   : > { %2465 = vst [vmem:[%s3599_s13 + $0x78] sm:$0xff] %v2401_v31  ;;  %v1590_v31 = vld [vmem:[%s3599_s13 + $0x130] sm:$0xff] }
 0x378   : > { %v2267_v34 = vpop.f32.mrb[16].mxu0 }
 0x379   : > { %v2402_v36 = vadd.f32 %v2267_v34, %v1568_v32  ;;  %v2269_v37 = vpop.f32.mrb[17].mxu0  ;;  %v1591_v34 = vld [vmem:[%s3599_s13 + $0x138] sm:$0xff] }
 0x37a   : > { %v2403_v42 = vadd.f32 %v2269_v37, %v1569_v33  ;;  %v2271_v43 = vpop.f32.mrb[18].mxu0 }
 0x37b   : > { %2466 = vst [vmem:[%s3599_s13 + $0x80] sm:$0xff] %v2402_v36  ;;  %v2404_v44 = vadd.f32 %v2271_v43, %v1570_v35  ;;  %v2273_v45 = vpop.f32.mrb[19].mxu0  ;;  %v1592_v43 = vld [vmem:[%s3599_s13 + $0x140] sm:$0xff] }
 0x37c   : > { %2467 = vst [vmem:[%s3599_s13 + $0x88] sm:$0xff] %v2403_v42  ;;  %v2405_v47 = vadd.f32 %v2273_v45, %v1571_v41 }
 0x37d   : > { %2468 = vst [vmem:[%s3599_s13 + $0x90] sm:$0xff] %v2404_v44  ;;  %v1593_v44 = vld [vmem:[%s3599_s13 + $0x148] sm:$0xff] }
 0x37e   : > { %2469 = vst [vmem:[%s3599_s13 + $0x98] sm:$0xff] %v2405_v47  ;;  %v1594_v47 = vld [vmem:[%s3599_s13 + $0x150] sm:$0xff] }
 0x380   : > { %v2277_v51 = vpop.f32.mrb[20].mxu0 }
 0x381   : > { %v2406_v48 = vadd.f32 %v2277_v51, %v1572_v49  ;;  %v2279_v54 = vpop.f32.mrb[21].mxu0  ;;  %v1595_v51 = vld [vmem:[%s3599_s13 + $0x158] sm:$0xff] }
 0x382   : > { %v2407_v52 = vadd.f32 %v2279_v54, %v1573_v50  ;;  %v2281_v9 = vpop.f32.mrb[22].mxu0 }
 0x383   : > { %2470 = vst [vmem:[%s3599_s13 + $0xa0] sm:$0xff] %v2406_v48  ;;  %v2408_v12 = vadd.f32 %v2281_v9, %v1574_v39  ;;  %v2283_v14 = vpop.f32.mrb[23].mxu0  ;;  %v1596_v9 = vld [vmem:[%s3599_s13 + $0x160] sm:$0xff] }
 0x384   : > { %2471 = vst [vmem:[%s3599_s13 + $0xa8] sm:$0xff] %v2407_v52  ;;  %v2409_v24 = vadd.f32 %v2283_v14, %v1575_v58 }
 0x385   : > { %2472 = vst [vmem:[%s3599_s13 + $0xb0] sm:$0xff] %v2408_v12  ;;  %v1597_v12 = vld [vmem:[%s3599_s13 + $0x168] sm:$0xff] }
 0x386   : > { %2473 = vst [vmem:[%s3599_s13 + $0xb8] sm:$0xff] %v2409_v24  ;;  %v1598_v24 = vld [vmem:[%s3599_s13 + $0x170] sm:$0xff] }
 0x388   : > { %v2287_v38 = vpop.f32.mrb[24].mxu0 }
 0x389   : > { %v2410_v55 = vadd.f32 %v2287_v38, %v1576_v53  ;;  %v2289_v57 = vpop.f32.mrb[25].mxu0  ;;  %v1599_v38 = vld [vmem:[%s3599_s13 + $0x178] sm:$0xff] }
 0x38a   : > { %v2411_v62 = vadd.f32 %v2289_v57, %v1577_v25  ;;  %v2291_v63 = vpop.f32.mrb[26].mxu0 }
 0x38b   : > { %2474 = vst [vmem:[%s3599_s13 + $0xc0] sm:$0xff] %v2410_v55  ;;  %v2412_v0 = vadd.f32 %v2291_v63, %v1578_v40  ;;  %v2293_v1 = vpop.f32.mrb[27].mxu0  ;;  %v1600_v63 = vld [vmem:[%s3599_s13 + $0x180] sm:$0xff] }
 0x38c   : > { %2475 = vst [vmem:[%s3599_s13 + $0xc8] sm:$0xff] %v2411_v62  ;;  %v2413_v3 = vadd.f32 %v2293_v1, %v1579_v61 }
 0x38d   : > { %2476 = vst [vmem:[%s3599_s13 + $0xd0] sm:$0xff] %v2412_v0  ;;  %v1601_v0 = vld [vmem:[%s3599_s13 + $0x188] sm:$0xff] }
 0x38e   : > { %2477 = vst [vmem:[%s3599_s13 + $0xd8] sm:$0xff] %v2413_v3  ;;  %v1602_v3 = vld [vmem:[%s3599_s13 + $0x190] sm:$0xff] }
 0x390   : > { %v2297_v7 = vpop.f32.mrb[28].mxu0 }
 0x391   : > { %v2414_v59 = vadd.f32 %v2297_v7, %v1580_v5  ;;  %v2299_v10 = vpop.f32.mrb[29].mxu0  ;;  %v1603_v7 = vld [vmem:[%s3599_s13 + $0x198] sm:$0xff] }
 0x392   : > { %v2415_v46 = vadd.f32 %v2299_v10, %v1581_v6  ;;  %v2301_v2 = vpop.f32.mrb[30].mxu0 }
 0x393   : > { %2478 = vst [vmem:[%s3599_s13 + $0xe0] sm:$0xff] %v2414_v59  ;;  %v2416_v13 = vadd.f32 %v2301_v2, %v1582_v8  ;;  %v2303_v15 = vpop.f32.mrb[31].mxu0  ;;  %v1604_v2 = vld [vmem:[%s3599_s13 + $0x1a0] sm:$0xff] }
 0x394   : > { %2479 = vst [vmem:[%s3599_s13 + $0xe8] sm:$0xff] %v2415_v46  ;;  %v2417_v4 = vadd.f32 %v2303_v15, %v1583_v11 }
 0x395   : > { %2480 = vst [vmem:[%s3599_s13 + $0xf0] sm:$0xff] %v2416_v13  ;;  %v1605_v13 = vld [vmem:[%s3599_s13 + $0x1a8] sm:$0xff] }
 0x396   : > { %2481 = vst [vmem:[%s3599_s13 + $0xf8] sm:$0xff] %v2417_v4  ;;  %v1606_v4 = vld [vmem:[%s3599_s13 + $0x1b0] sm:$0xff] }
 0x398   : > { %v2307_v18 = vpop.f32.mrb[32].mxu0 }
 0x399   : > { %v2418_v56 = vadd.f32 %v2307_v18, %v1584_v16  ;;  %v2309_v20 = vpop.f32.mrb[33].mxu0  ;;  %v1607_v18 = vld [vmem:[%s3599_s13 + $0x1b8] sm:$0xff] }
 0x39a   : > { %v2419_v22 = vadd.f32 %v2309_v20, %v1585_v17  ;;  %v2311_v23 = vpop.f32.mrb[34].mxu0 }
 0x39b   : > { %2482 = vst [vmem:[%s3599_s13 + $0x100] sm:$0xff] %v2418_v56  ;;  %v2420_v26 = vadd.f32 %v2311_v23, %v1586_v19  ;;  %v2313_v27 = vpop.f32.mrb[35].mxu0  ;;  %v1608_v23 = vld [vmem:[%s3599_s13 + $0x1c0] sm:$0xff] }
 0x39c   : > { %2483 = vst [vmem:[%s3599_s13 + $0x108] sm:$0xff] %v2419_v22  ;;  %v2421_v28 = vadd.f32 %v2313_v27, %v1587_v21 }
 0x39d   : > { %2484 = vst [vmem:[%s3599_s13 + $0x110] sm:$0xff] %v2420_v26  ;;  %v1609_v26 = vld [vmem:[%s3599_s13 + $0x1c8] sm:$0xff] }
 0x39e   : > { %2485 = vst [vmem:[%s3599_s13 + $0x118] sm:$0xff] %v2421_v28  ;;  %v1610_v28 = vld [vmem:[%s3599_s13 + $0x1d0] sm:$0xff] }
 0x3a0   : > { %v2317_v30 = vpop.f32.mrb[36].mxu0 }
 0x3a1   : > { %v2422_v32 = vadd.f32 %v2317_v30, %v1588_v60  ;;  %v2319_v33 = vpop.f32.mrb[37].mxu0  ;;  %v1611_v30 = vld [vmem:[%s3599_s13 + $0x1d8] sm:$0xff] }
 0x3a2   : > { %v2423_v35 = vadd.f32 %v2319_v33, %v1589_v29  ;;  %v2321_v36 = vpop.f32.mrb[38].mxu0 }
 0x3a3   : > { %2486 = vst [vmem:[%s3599_s13 + $0x120] sm:$0xff] %v2422_v32  ;;  %v2424_v37 = vadd.f32 %v2321_v36, %v1590_v31  ;;  %v2323_v41 = vpop.f32.mrb[39].mxu0  ;;  %v1612_v36 = vld [vmem:[%s3599_s13 + $0x1e0] sm:$0xff] }
 0x3a4   : > { %2487 = vst [vmem:[%s3599_s13 + $0x128] sm:$0xff] %v2423_v35  ;;  %v2425_v42 = vadd.f32 %v2323_v41, %v1591_v34 }
 0x3a5   : > { %2488 = vst [vmem:[%s3599_s13 + $0x130] sm:$0xff] %v2424_v37  ;;  %v1613_v37 = vld [vmem:[%s3599_s13 + $0x1e8] sm:$0xff] }
 0x3a6   : > { %2489 = vst [vmem:[%s3599_s13 + $0x138] sm:$0xff] %v2425_v42  ;;  %v1614_v42 = vld [vmem:[%s3599_s13 + $0x1f0] sm:$0xff] }
 0x3a8   : > { %v2327_v45 = vpop.f32.mrb[40].mxu0 }
 0x3a9   : > { %v2426_v49 = vadd.f32 %v2327_v45, %v1592_v43  ;;  %v2329_v50 = vpop.f32.mrb[41].mxu0  ;;  %v1615_v45 = vld [vmem:[%s3599_s13 + $0x1f8] sm:$0xff] }
 0x3aa   : > { %v2427_v39 = vadd.f32 %v2329_v50, %v1593_v44  ;;  %v2331_v48 = vpop.f32.mrb[42].mxu0 }
 0x3ab   : > { %2490 = vst [vmem:[%s3599_s13 + $0x140] sm:$0xff] %v2426_v49  ;;  %v2428_v54 = vadd.f32 %v2331_v48, %v1594_v47  ;;  %v2333_v58 = vpop.f32.mrb[43].mxu0 }
 0x3ac   : > { %2491 = vst [vmem:[%s3599_s13 + $0x148] sm:$0xff] %v2427_v39  ;;  %v2429_v52 = vadd.f32 %v2333_v58, %v1595_v51 }
 0x3ad   : > { %2492 = vst [vmem:[%s3599_s13 + $0x150] sm:$0xff] %v2428_v54 }
 0x3ae   : > { %2493 = vst [vmem:[%s3599_s13 + $0x158] sm:$0xff] %v2429_v52 }
 0x3b0   : > { %v2337_v14 = vpop.f32.mrb[44].mxu0 }
 0x3b1   : > { %v2430_v53 = vadd.f32 %v2337_v14, %v1596_v9  ;;  %v2339_v25 = vpop.f32.mrb[45].mxu0 }
 0x3b2   : > { %v2431_v40 = vadd.f32 %v2339_v25, %v1597_v12  ;;  %v2341_v55 = vpop.f32.mrb[46].mxu0 }
 0x3b3   : > { %2494 = vst [vmem:[%s3599_s13 + $0x160] sm:$0xff] %v2430_v53  ;;  %v2432_v57 = vadd.f32 %v2341_v55, %v1598_v24  ;;  %v2343_v61 = vpop.f32.mrb[47].mxu0 }
 0x3b4   : > { %2495 = vst [vmem:[%s3599_s13 + $0x168] sm:$0xff] %v2431_v40  ;;  %v2433_v62 = vadd.f32 %v2343_v61, %v1599_v38 }
 0x3b5   : > { %2496 = vst [vmem:[%s3599_s13 + $0x170] sm:$0xff] %v2432_v57 }
 0x3b6   : > { %2497 = vst [vmem:[%s3599_s13 + $0x178] sm:$0xff] %v2433_v62 }
 0x3b8   : > { %v2347_v1 = vpop.f32.mrb[48].mxu0 }
 0x3b9   : > { %v2434_v5 = vadd.f32 %v2347_v1, %v1600_v63  ;;  %v2349_v6 = vpop.f32.mrb[49].mxu0 }
 0x3ba   : > { %v2435_v8 = vadd.f32 %v2349_v6, %v1601_v0  ;;  %v2351_v59 = vpop.f32.mrb[50].mxu0 }
 0x3bb   : > { %2498 = vst [vmem:[%s3599_s13 + $0x180] sm:$0xff] %v2434_v5  ;;  %v2436_v10 = vadd.f32 %v2351_v59, %v1602_v3  ;;  %v2353_v11 = vpop.f32.mrb[51].mxu0 }
 0x3bc   : > { %2499 = vst [vmem:[%s3599_s13 + $0x188] sm:$0xff] %v2435_v8  ;;  %v2437_v46 = vadd.f32 %v2353_v11, %v1603_v7 }
 0x3bd   : > { %2500 = vst [vmem:[%s3599_s13 + $0x190] sm:$0xff] %v2436_v10 }
 0x3be   : > { %2501 = vst [vmem:[%s3599_s13 + $0x198] sm:$0xff] %v2437_v46 }
 0x3c0   : > { %v2357_v15 = vpop.f32.mrb[52].mxu0 }
 0x3c1   : > { %v2438_v16 = vadd.f32 %v2357_v15, %v1604_v2  ;;  %v2359_v17 = vpop.f32.mrb[53].mxu0 }
 0x3c2   : > { %v2439_v19 = vadd.f32 %v2359_v17, %v1605_v13  ;;  %v2361_v56 = vpop.f32.mrb[54].mxu0 }
 0x3c3   : > { %2502 = vst [vmem:[%s3599_s13 + $0x1a0] sm:$0xff] %v2438_v16  ;;  %v2440_v20 = vadd.f32 %v2361_v56, %v1606_v4  ;;  %v2363_v21 = vpop.f32.mrb[55].mxu0 }
 0x3c4   : > { %2503 = vst [vmem:[%s3599_s13 + $0x1a8] sm:$0xff] %v2439_v19  ;;  %v2441_v22 = vadd.f32 %v2363_v21, %v1607_v18 }
 0x3c5   : > { %2504 = vst [vmem:[%s3599_s13 + $0x1b0] sm:$0xff] %v2440_v20 }
 0x3c6   : > { %2505 = vst [vmem:[%s3599_s13 + $0x1b8] sm:$0xff] %v2441_v22 }
 0x3c8   : > { %v2367_v27 = vpop.f32.mrb[56].mxu0 }
 0x3c9   : > { %v2442_v60 = vadd.f32 %v2367_v27, %v1608_v23  ;;  %v2369_v29 = vpop.f32.mrb[57].mxu0 }
 0x3ca   : > { %v2443_v31 = vadd.f32 %v2369_v29, %v1609_v26  ;;  %v2371_v32 = vpop.f32.mrb[58].mxu0 }
 0x3cb   : > { %2506 = vst [vmem:[%s3599_s13 + $0x1c0] sm:$0xff] %v2442_v60  ;;  %v2444_v33 = vadd.f32 %v2371_v32, %v1610_v28  ;;  %v2373_v34 = vpop.f32.mrb[59].mxu0 }
 0x3cc   : > { %2507 = vst [vmem:[%s3599_s13 + $0x1c8] sm:$0xff] %v2443_v31  ;;  %v2445_v35 = vadd.f32 %v2373_v34, %v1611_v30 }
 0x3cd   : > { %2508 = vst [vmem:[%s3599_s13 + $0x1d0] sm:$0xff] %v2444_v33 }
 0x3ce   : > { %2509 = vst [vmem:[%s3599_s13 + $0x1d8] sm:$0xff] %v2445_v35 }
 0x3d0   : > { %v2377_v41 = vpop.f32.mrb[60].mxu0  ;;  %2521 = sbr.rel (!%p4421_p5) target bundleno = 1012 (0x3f4), region = 64 }
 0x3d1   : > { %v2446_v43 = vadd.f32 %v2377_v41, %v1612_v36  ;;  %v2379_v44 = vpop.f32.mrb[61].mxu0 }
 0x3d2   : > { %v2447_v47 = vadd.f32 %v2379_v44, %v1613_v37  ;;  %v2381_v49 = vpop.f32.mrb[62].mxu0 }
 0x3d3   : > { %2510 = vst [vmem:[%s3599_s13 + $0x1e0] sm:$0xff] %v2446_v43  ;;  %v2448_v50 = vadd.f32 %v2381_v49, %v1614_v42  ;;  %v2383_v51 = vpop.f32.mrb[63].mxu0 }
 0x3d4   : > { %2511 = vst [vmem:[%s3599_s13 + $0x1e8] sm:$0xff] %v2447_v47  ;;  %v2449_v39 = vadd.f32 %v2383_v51, %v1615_v45 }
 0x3d5   : > { %2512 = vst [vmem:[%s3599_s13 + $0x1f0] sm:$0xff] %v2448_v50 }
 0x3d6   : > { %2513 = vst [vmem:[%s3599_s13 + $0x1f8] sm:$0xff] %v2449_v39 }
 0x3d7   : > { %s4445_s11 = smov (!%p2524_p8, %s2523_s11), 32 }
 0x3d8   : > { %s4316_s16 = sshll.u32 %s4445_s11, 8 }
 0x3d9   : > { %s2529_s30 = ssub.s32 8192, %s4316_s16 }
 0x3da   : > { %2530 = vsyncadd %s2515_s12, %s2529_s30  ;;  %p2813_p6 = scmp.ne.s32.totalorder %s4316_s16, 0  ;;  %s2826_s9 = sshll.u32 %s4422_s18, 13 }
 0x3db   : > { %s4423_s26 = sld [smem:[#allocation23_spill]]  ;;  %s2536_s15 = sshll.u32 %s3599_s13, 4  ;;  %s4329_s15 = int_to_ptr.vmem [resolvable:$true] %s2536_s15 }
 0x3dc   : > { %s3209_s7 = scalar_lea.vmem %s4329_s15, %s4316_s16  ;;  %s3327_s8 = smov [#allocation11]  }
 0x3dd   : > { %p3210_p9 = scmp.ne.s32.totalorder %s4329_s15, %s3209_s7  ;;  %s3213_s28 = sshll.u32 %s3327_s8, 4  ;;  %s3214_s28 = int_to_ptr.vmem [resolvable:$false] %s3213_s28 }
 0x3de   : > { %s3215_s29 = scalar_lea.vmem %s3214_s28, 16384  ;;  %p3216_p3 = scmp.lt.s32.totalorder %s4329_s15, %s3214_s28 }
 0x3df   : > { %p3211_p10 = pnand %p3210_p9, %p2813_p6  ;;  %p3217_p4 = scmp.lt.s32.totalorder %s3215_s29, %s3209_s7 }
 0x3e1   : > { %s4326_s23 = scalar_lea.hbm %s4423_s26, %s2826_s9  ;;  %p3212_p11 = pneg %p3211_p10 }
 0x3e2   : > { %p3218_p7 = por %p3217_p4, %p3216_p3 }
 0x3e4   : > { %p3219_p13 = pnand %p3218_p7, %p3212_p11 }
 0x3e6   : > { %3222 = shalt.err (!%p3219_p13)
}
 0x3e7   : > { %s3223_s13 = scalar_lea.hbm %s4326_s23, %s4316_s16  ;;  %s3227_s5 = scalar_lea.hbm %s4423_s26, 12800 }
 0x3e8   : > { %p3224_p12 = scmp.ne.s32.totalorder %s4326_s23, %s3223_s13  ;;  %p3228_p1 = scmp.lt.u32.totalorder %s4326_s23, %s4423_s26 }
 0x3e9   : > { %p3229_p5 = scmp.lt.u32.totalorder %s3227_s5, %s3223_s13  ;;  %p3231_p9 = scmp.lt.u32.totalorder %s3223_s13, %s4326_s23 }
 0x3ea   : > { %p3225_p0 = pnand %p3224_p12, %p2813_p6 }
 0x3eb   : > { %p3230_p8 = por %p3229_p5, %p3228_p1 }
 0x3ec   : > { %p3226_p2 = pneg %p3225_p0 }
 0x3ed   : > { %p3232_p10 = por %p3231_p9, %p3230_p8 }
 0x3ef   : > { %p3233_p11 = pnand %p3232_p10, %p3226_p2 }
 0x3f1   : > { %3236 = shalt.err (!%p3233_p11)
}
 0x3f2   : > { %s3328_s22 = smov 256   ;;  %s3329_s11 = smov 16  }
 0x3f3   : > { %2542 = dma.vmem_to_hbm [thread:$0]  (%p2813_p6), %s4329_s15, %s4316_s16, %s4326_s23, %s2515_s12, %s3328_s22, %s3328_s22, %s3329_s11  }
 0x3f4 PF: > { %s4424_s30 = sld [smem:[#allocation16_spill]]  ;;  %s4425_s9 = sld [smem:[#allocation21_spill]] }
 0x3f5   : > { %p2925_p3 = scmp.ge.s32.totalorder %s3315_s25, 2 }
 0x3fa   : > { %s2551_s6 = sand.u32 1, %s4424_s30   ;;  %p4426_p4 = scmp.ne.s32.totalorder %s4425_s9, 0 }
 0x3fb   : > { %s2552_s10 = scalar_lea.sflag [#allocation5], %s2551_s6 }
 0x3fc   : > { %p2916_p7 = pnand %p2925_p3, %p4426_p4 }
 0x3fe   : > { %3282 = dma.done.wait (!%p2916_p7), %s2552_s10, 8192  }
 0x3ff   : > { %3284 = vsyncadd (!%p2916_p7), %s2552_s10, 4294959104  ;;  %s23_s25 = sadd.s32 1, %s3315_s25   ;;  %s4427_s7 = sld [smem:[#allocation22_spill]] }
 0x400   : > { %p20_p13 = scmp.ge.s32.totalorder %s23_s25, 6   ;;  %s4428_s21 = sld [smem:[#allocation18_spill]] }
 0x401   : > { %s4429_s23 = sld [smem:[#allocation19_spill]]  ;;  %s4430_s14 = sld [smem:[#allocation20_spill]] }
 0x402   : > { %s4431_s18 = smov %s3291_s19  ;;  %s4432_s19 = smov %s3295_s20 }
 0x403   : > { %s4434_s22 = smov %s3311_s24  ;;  %22 = sbr.rel (!%p20_p13) target bundleno = 11 (0xb), region = 104 }
 0x405   : > { %s4433_s20 = smov %s4427_s7 }
 0x407   : > { %s4435_s24 = smov %s4430_s14 }
 0x40a   :  { %2557 = vsyncpa [#allocation4], 1 }
 0x40b   :  { %2559 = vsyncpa [#allocation4 + $0x1], 1 }
 0x40c   :  { %2560 = vsyncpa [#allocation7], 1 }
 0x40d   :  { %2561 = vsyncpa [#allocation10], 1 }
 0x40e   :  { %2562 = vsyncpa [#allocation5], 1 }
 0x40f   :  { %2564 = vsyncpa [#allocation5 + $0x1], 1 }

</bundles_post_ra>
